<compile_context>
chip_gen: v5e
topology: v5e:2x2
jax: 0.10.0
libtpu: 0.0.40
codegen_flags: <defaults>
</compile_context>

<pallas_src>
import functools
import math

import jax
import jax.numpy as jnp
from jax.experimental import pallas as pl
from jax.experimental.pallas import tpu as pltpu

EPS = 1e-5          # torch.nn.LayerNorm default
NEG_INF = -1e30     # finite mask value (no 0/0 NaN on fully-masked rows)


def _layer_norm(x, gamma, beta):
    mu = jnp.mean(x, axis=-1, keepdims=True)
    var = jnp.mean((x - mu) ** 2, axis=-1, keepdims=True)
    return (x - mu) * jax.lax.rsqrt(var + EPS) * gamma + beta


# ----------------------------------------------------------------------------
# Fused forward kernel: one grid step = one transformer block for one batch
# row; step 0 also does the embedding gather, last step the LN_f + lm_head.
# ----------------------------------------------------------------------------
def forward_kernel(idx_ref, tok_ref, pos_ref,
                   ln1_g_ref, ln1_b_ref, w_qkv_ref, wo_ref, bo_ref,
                   ln2_g_ref, ln2_b_ref, w1_ref, b1_ref, w2_ref, b2_ref,
                   lnf_g_ref, lnf_b_ref, lm_w_ref, lm_b_ref,
                   o_ref, x_scr, *, n_head):
    lyr = pl.program_id(1)
    n_layer = pl.num_programs(1)
    V, C = tok_ref.shape
    T = x_scr.shape[0]
    H = n_head
    hs = C // H

    # ---- step l==0: fused embedding lookup (one-hot MXU gather) + pos add ----
    @pl.when(lyr == 0)
    def _init():
        ids = idx_ref[0]                                           # (T, 1) int32
        cols = jax.lax.broadcasted_iota(jnp.int32, (T, V), 1)
        one_hot = (ids == cols).astype(jnp.float32)                # (T, V)
        tok = jnp.dot(one_hot, tok_ref[...],
                      preferred_element_type=jnp.float32,
                      precision=jax.lax.Precision.HIGHEST)         # exact gather
        x_scr[...] = tok + pos_ref[...]

    x = x_scr[...]                                                 # (T, C) f32

    # ---- pre-norm causal multi-head self-attention (fused QKV) ----
    xn = _layer_norm(x, ln1_g_ref[0], ln1_b_ref[0])
    qkv = jnp.dot(xn.astype(jnp.bfloat16), w_qkv_ref[0],
                  preferred_element_type=jnp.float32)              # (T, 3C)
    # 1/sqrt(hs) scale is already folded into the Q slice of w_qkv.
    q3 = qkv[:, 0 * C:1 * C].reshape(T, H, hs)
    k3 = qkv[:, 1 * C:2 * C].reshape(T, H, hs)
    v3 = qkv[:, 2 * C:3 * C].reshape(T, H, hs)

    s = jnp.einsum('qhd,khd->hqk',
                   q3.astype(jnp.bfloat16), k3.astype(jnp.bfloat16),
                   preferred_element_type=jnp.float32)             # (H, T, T)
    row = jax.lax.broadcasted_iota(jnp.int32, (T, T), 0)
    col = jax.lax.broadcasted_iota(jnp.int32, (T, T), 1)
    s = jnp.where((row >= col)[None, :, :], s, NEG_INF)
    s = s - jnp.max(s, axis=-1, keepdims=True)
    p = jnp.exp(s)
    p = p * pl.reciprocal(jnp.sum(p, axis=-1, keepdims=True), approx=True)

    att = jnp.einsum('hqk,khd->qhd',
                     p.astype(jnp.bfloat16), v3.astype(jnp.bfloat16),
                     preferred_element_type=jnp.float32)           # (T, H, hs)
    att = att.reshape(T, C)
    att = jnp.dot(att.astype(jnp.bfloat16), wo_ref[0],
                  preferred_element_type=jnp.float32) + bo_ref[0]
    x = x + att                                                    # residual (f32)

    # ---- pre-norm MLP ----
    xn2 = _layer_norm(x, ln2_g_ref[0], ln2_b_ref[0])
    h1 = jnp.maximum(
        jnp.dot(xn2.astype(jnp.bfloat16), w1_ref[0],
                preferred_element_type=jnp.float32) + b1_ref[0], 0.0)
    x = x + (jnp.dot(h1.astype(jnp.bfloat16), w2_ref[0],
                     preferred_element_type=jnp.float32) + b2_ref[0])

    x_scr[...] = x                                                 # carry to next layer

    # ---- epilogue on last layer: final LN + lane-dense lm_head ----
    @pl.when(lyr == n_layer - 1)
    def _final():
        xf = _layer_norm(x, lnf_g_ref[...], lnf_b_ref[...])
        logits = jnp.dot(xf.astype(jnp.bfloat16), lm_w_ref[...],
                         preferred_element_type=jnp.float32) + lm_b_ref[...]
        o_ref[...] = logits.reshape(1, T, -1).astype(o_ref.dtype)


# ----------------------------------------------------------------------------
# Parameter init: all weight packing (fused QKV + folded scale, bf16 matmul
# weights, lane-padded lm_head) happens here, once.
# ----------------------------------------------------------------------------
def init_params(key, vocab_size, n_embd, block_size, n_layer, n_head):
    C = n_embd
    assert C % n_head == 0, "n_embd must be divisible by n_head"
    hs = C // n_head
    scale = 1.0 / math.sqrt(hs)
    # Lane-dense logits width (multiple of 128; prefer 256 for big V on v6e/v7x).
    Vpad = ((vocab_size + 127) // 128) * 128

    keys = iter(jax.random.split(key, 3 + 6 * n_layer))

    def normal(shape, std=0.02):
        return (std * jax.random.normal(next(keys), shape)).astype(jnp.float32)

    def stack(fn):
        return jnp.stack([fn() for _ in range(n_layer)])

    # Fused QKV weight, attention scale folded into the Q slice.
    w_qkv = stack(lambda: jnp.concatenate(
        [normal((C, C)) * scale, normal((C, C)), normal((C, C))], axis=-1))

    params = {
        "tok_emb": normal((vocab_size, C)),
        "pos_emb": normal((block_size, C)),
        # Per-layer stacked weights (leading axis = layer); matmul weights bf16.
        "ln1_g": jnp.ones((n_layer, 1, C), jnp.float32),
        "ln1_b": jnp.zeros((n_layer, 1, C), jnp.float32),
        "w_qkv": w_qkv.astype(jnp.bfloat16),
        "wo": stack(lambda: normal((C, C))).astype(jnp.bfloat16),
        "bo": jnp.zeros((n_layer, 1, C), jnp.float32),
        "ln2_g": jnp.ones((n_layer, 1, C), jnp.float32),
        "ln2_b": jnp.zeros((n_layer, 1, C), jnp.float32),
        "w1": stack(lambda: normal((C, 4 * C))).astype(jnp.bfloat16),
        "b1": jnp.zeros((n_layer, 1, 4 * C), jnp.float32),
        "w2": stack(lambda: normal((4 * C, C))).astype(jnp.bfloat16),
        "b2": jnp.zeros((n_layer, 1, C), jnp.float32),
        # Final LN + lm_head (vocab pre-padded to lane-dense width).
        "ln_f_g": jnp.ones((1, C), jnp.float32),
        "ln_f_b": jnp.zeros((1, C), jnp.float32),
        "lm_w": jnp.pad(normal((C, vocab_size)),
                        ((0, 0), (0, Vpad - vocab_size))).astype(jnp.bfloat16),
        "lm_b": jnp.zeros((1, Vpad), jnp.float32),
    }
    return params


# ----------------------------------------------------------------------------
# Forward wrapper (== BigramLanguageModel.forward(idx, targets=None)).
# ----------------------------------------------------------------------------
def bigram_forward(params, idx, n_head, vocab_size):
    B, T = idx.shape
    V_emb, C = params["tok_emb"].shape
    n_layer = params["w_qkv"].shape[0]
    Vpad = params["lm_w"].shape[1]
    assert C % n_head == 0, "n_embd must be divisible by n_head"
    assert T <= params["pos_emb"].shape[0], "sequence longer than block_size"

    idx3 = idx.reshape(B, T, 1).astype(jnp.int32)
    pos = params["pos_emb"][:T]

    # ---- BlockSpecs: streamed per-layer weights vs resident constants ----
    def lw(shape):                       # per-layer streamed weight block
        return pl.BlockSpec((1,) + shape, lambda b, l: (l, 0, 0))

    def const2(shape):                   # resident (constant index) 2-D block
        return pl.BlockSpec(shape, lambda b, l: (0, 0))

    in_specs = [
        pl.BlockSpec((1, T, 1), lambda b, l: (b, 0, 0)),       # idx
        const2((V_emb, C)),                                    # tok_emb
        const2((T, C)),                                        # pos_emb
        lw((1, C)), lw((1, C)),                                # ln1 gamma/beta
        lw((C, 3 * C)),                                        # fused w_qkv
        lw((C, C)), lw((1, C)),                                # wo, bo
        lw((1, C)), lw((1, C)),                                # ln2 gamma/beta
        lw((C, 4 * C)), lw((1, 4 * C)),                        # w1, b1
        lw((4 * C, C)), lw((1, C)),                            # w2, b2
        const2((1, C)), const2((1, C)),                        # ln_f gamma/beta
        const2((C, Vpad)), const2((1, Vpad)),                  # lm_w, lm_b
    ]
    out_spec = pl.BlockSpec((1, T, Vpad), lambda b, l: (b, 0, 0))

    # ---- VMEM budget (double-buffered per-layer weights + residents), capped
    # under v7x's 64 MiB with headroom ----
    w_layer = 2 * 12 * C * C + 4 * 10 * C            # bf16 matmuls + f32 ln/bias
    resident = (4 * (V_emb * C + T * C + 2 * C + Vpad)
                + 2 * C * Vpad + 4 * T)              # tok/pos/ln_f/lm_b/lm_w/idx
    act = 4 * T * C + 4 * T * Vpad                   # scratch carry + out block
    vmem_limit = int(min(48 * 1024 * 1024,
                         max(8 * 1024 * 1024,
                             4 * w_layer + 2 * (resident + act) + (4 << 20))))

    # ---- advisory cost estimate so XLA schedules around the fused kernel ----
    flops = B * (n_layer * (24 * T * C * C + 4 * T * T * C)
                 + 2 * T * C * Vpad + 2 * T * V_emb * C)
    transcendentals = B * n_layer * n_head * T * T
    bytes_accessed = (B * n_layer * (2 * 12 * C * C)
                      + 2 * C * Vpad + 4 * (V_emb * C + T * C)
                      + B * T * Vpad * 4 + B * T * 4)

    kernel = functools.partial(forward_kernel, n_head=n_head)
    logits_pad = pl.pallas_call(
        kernel,
        out_shape=jax.ShapeDtypeStruct((B, T, Vpad), jnp.float32),
        grid_spec=pltpu.PrefetchScalarGridSpec(
            num_scalar_prefetch=0,
            grid=(B, n_layer),
            in_specs=in_specs,
            out_specs=out_spec,
            scratch_shapes=[pltpu.VMEM((T, C), jnp.float32)]),
        compiler_params=pltpu.CompilerParams(
            dimension_semantics=("parallel", "arbitrary"),
            vmem_limit_bytes=vmem_limit),
        cost_estimate=pl.CostEstimate(
            flops=int(flops),
            transcendentals=int(transcendentals),
            bytes_accessed=int(bytes_accessed)),
    )(idx3, params["tok_emb"], pos,
      params["ln1_g"], params["ln1_b"], params["w_qkv"],
      params["wo"], params["bo"],
      params["ln2_g"], params["ln2_b"],
      params["w1"], params["b1"], params["w2"], params["b2"],
      params["ln_f_g"], params["ln_f_b"], params["lm_w"], params["lm_b"])

    logits = logits_pad[:, :, :vocab_size]            # drop vocab padding
    return logits, None


if __name__ == "__main__":
    # Small shapes consistent with the module.
    vocab_size = 64
    n_embd = 32
    block_size = 8
    n_layer = 2
    n_head = 4
    B, T = 2, 8

    key = jax.random.PRNGKey(0)
    k_params, k_idx = jax.random.split(key)
    params = init_params(k_params, vocab_size, n_embd, block_size, n_layer, n_head)
    idx = jax.random.randint(k_idx, (B, T), 0, vocab_size, dtype=jnp.int32)

    logits, loss = bigram_forward(params, idx, n_head, vocab_size)
    logits = jax.block_until_ready(logits)

    assert logits.shape == (B, T, vocab_size), logits.shape
    assert loss is None
    assert bool(jnp.all(jnp.isfinite(logits)))
    print("KERNEL_OK")
</pallas_src>

<mosaic_0001>
module attributes {stable_mosaic.version = 11 : i64} {
  func.func @forward_kernel(%arg0: i32, %arg1: i32, %arg2: memref<1x8x1xi32, #tpu.memory_space<vmem>>, %arg3: memref<64x32xf32, #tpu.memory_space<vmem>>, %arg4: memref<8x32xf32, #tpu.memory_space<vmem>>, %arg5: memref<1x1x32xf32, #tpu.memory_space<vmem>>, %arg6: memref<1x1x32xf32, #tpu.memory_space<vmem>>, %arg7: memref<1x32x96xbf16, #tpu.memory_space<vmem>>, %arg8: memref<1x32x32xbf16, #tpu.memory_space<vmem>>, %arg9: memref<1x1x32xf32, #tpu.memory_space<vmem>>, %arg10: memref<1x1x32xf32, #tpu.memory_space<vmem>>, %arg11: memref<1x1x32xf32, #tpu.memory_space<vmem>>, %arg12: memref<1x32x128xbf16, #tpu.memory_space<vmem>>, %arg13: memref<1x1x128xf32, #tpu.memory_space<vmem>>, %arg14: memref<1x128x32xbf16, #tpu.memory_space<vmem>>, %arg15: memref<1x1x32xf32, #tpu.memory_space<vmem>>, %arg16: memref<1x32xf32, #tpu.memory_space<vmem>>, %arg17: memref<1x32xf32, #tpu.memory_space<vmem>>, %arg18: memref<32x128xbf16, #tpu.memory_space<vmem>>, %arg19: memref<1x128xf32, #tpu.memory_space<vmem>>, %arg20: memref<1x8x128xf32, #tpu.memory_space<vmem>>, %arg21: memref<8x32xf32, #tpu.memory_space<vmem>>) attributes {dimension_semantics = [#tpu.dimension_semantics<parallel>, #tpu.dimension_semantics<arbitrary>], iteration_bounds = array<i64: 2, 2>, scalar_prefetch = 0 : i64, scratch_operands = 1 : i64, tpu.core_type = #tpu.core_type<tc>, window_params = [{transform_indices = @transform_0, window_bounds = array<i64: 1, 8, 1>}, {pipeline_mode = #tpu.pipeline_mode<synchronous>, transform_indices = @transform_1, window_bounds = array<i64: 64, 32>}, {pipeline_mode = #tpu.pipeline_mode<synchronous>, transform_indices = @transform_2, window_bounds = array<i64: 8, 32>}, {transform_indices = @transform_3, window_bounds = array<i64: 1, 1, 32>}, {transform_indices = @transform_4, window_bounds = array<i64: 1, 1, 32>}, {transform_indices = @transform_5, window_bounds = array<i64: 1, 32, 96>}, {transform_indices = @transform_6, window_bounds = array<i64: 1, 32, 32>}, {transform_indices = @transform_7, window_bounds = array<i64: 1, 1, 32>}, {transform_indices = @transform_8, window_bounds = array<i64: 1, 1, 32>}, {transform_indices = @transform_9, window_bounds = array<i64: 1, 1, 32>}, {transform_indices = @transform_10, window_bounds = array<i64: 1, 32, 128>}, {transform_indices = @transform_11, window_bounds = array<i64: 1, 1, 128>}, {transform_indices = @transform_12, window_bounds = array<i64: 1, 128, 32>}, {transform_indices = @transform_13, window_bounds = array<i64: 1, 1, 32>}, {pipeline_mode = #tpu.pipeline_mode<synchronous>, transform_indices = @transform_14, window_bounds = array<i64: 1, 32>}, {pipeline_mode = #tpu.pipeline_mode<synchronous>, transform_indices = @transform_15, window_bounds = array<i64: 1, 32>}, {pipeline_mode = #tpu.pipeline_mode<synchronous>, transform_indices = @transform_16, window_bounds = array<i64: 32, 128>}, {pipeline_mode = #tpu.pipeline_mode<synchronous>, transform_indices = @transform_17, window_bounds = array<i64: 1, 128>}, {transform_indices = @transform_18, window_bounds = array<i64: 1, 8, 128>}]} {
    %c0_i32 = arith.constant 0 : i32
    %0 = arith.cmpi eq, %arg1, %c0_i32 : i32
    %1 = arith.extui %0 : i1 to i32
    %c0_i32_0 = arith.constant 0 : i32
    %2 = arith.cmpi ne, %1, %c0_i32_0 : i32
    scf.if %2 {
      %c0_57 = arith.constant 0 : index
      %c0_58 = arith.constant 0 : index
      %c0_59 = arith.constant 0 : index
      %124 = vector.load %arg2[%c0_57, %c0_58, %c0_59] : memref<1x8x1xi32, #tpu.memory_space<vmem>>, vector<1x8x1xi32>
      %125 = vector.shape_cast %124 : vector<1x8x1xi32> to vector<8x1xi32>
      %126 = tpu.iota {dimensions = array<i32: 1>} : vector<8x64xi32>
      %127 = vector.broadcast %125 : vector<8x1xi32> to vector<8x64xi32>
      %128 = arith.cmpi eq, %127, %126 : vector<8x64xi32>
      %129 = arith.extui %128 : vector<8x64xi1> to vector<8x64xi32>
      %130 = arith.sitofp %129 : vector<8x64xi32> to vector<8x64xf32>
      %c0_60 = arith.constant 0 : index
      %c0_61 = arith.constant 0 : index
      %131 = vector.load %arg3[%c0_60, %c0_61] : memref<64x32xf32, #tpu.memory_space<vmem>>, vector<64x32xf32>
      %cst_62 = arith.constant dense<0.000000e+00> : vector<8x32xf32>
      %132 = tpu.matmul %130, %131, %cst_62 {dimension_numbers = #tpu.dot_dimension_numbers<[1], [0], [0], [1], [0, 0, 1, 1], [], []>, precision = #tpu.contract_precision<fp32>} : vector<8x64xf32>, vector<64x32xf32>, vector<8x32xf32> -> vector<8x32xf32>
      %c0_63 = arith.constant 0 : index
      %c0_64 = arith.constant 0 : index
      %133 = vector.load %arg4[%c0_63, %c0_64] : memref<8x32xf32, #tpu.memory_space<vmem>>, vector<8x32xf32>
      %134 = arith.addf %132, %133 : vector<8x32xf32>
      %c0_65 = arith.constant 0 : index
      %c0_66 = arith.constant 0 : index
      %135 = vector.load %arg21[%c0_65, %c0_66] : memref<8x32xf32, #tpu.memory_space<vmem>>, vector<8x32xf32>
      tpu.vector_store %arg21[%c0_65, %c0_66], %134 {strides = array<i32>} : memref<8x32xf32, #tpu.memory_space<vmem>>, vector<8x32xf32>,
    } else {
    }
    %c0 = arith.constant 0 : index
    %c0_1 = arith.constant 0 : index
    %3 = vector.load %arg21[%c0, %c0_1] : memref<8x32xf32, #tpu.memory_space<vmem>>, vector<8x32xf32>
    %c0_2 = arith.constant 0 : index
    %c0_3 = arith.constant 0 : index
    %c0_4 = arith.constant 0 : index
    %4 = vector.load %arg5[%c0_2, %c0_3, %c0_4] : memref<1x1x32xf32, #tpu.memory_space<vmem>>, vector<1x1x32xf32>
    %5 = vector.shape_cast %4 : vector<1x1x32xf32> to vector<1x32xf32>
    %c0_5 = arith.constant 0 : index
    %c0_6 = arith.constant 0 : index
    %c0_7 = arith.constant 0 : index
    %6 = vector.load %arg6[%c0_5, %c0_6, %c0_7] : memref<1x1x32xf32, #tpu.memory_space<vmem>>, vector<1x1x32xf32>
    %7 = vector.shape_cast %6 : vector<1x1x32xf32> to vector<1x32xf32>
    %cst = arith.constant dense<0.000000e+00> : vector<8xf32>
    %8 = vector.multi_reduction <add>, %3, %cst [1] : vector<8x32xf32> to vector<8xf32>
    %9 = vector.shape_cast %8 : vector<8xf32> to vector<8x1xf32>
    %cst_8 = arith.constant 3.200000e+01 : f32
    %10 = vector.broadcast %cst_8 : f32 to vector<8x1xf32>
    %11 = arith.divf %9, %10 : vector<8x1xf32>
    %12 = vector.broadcast %11 : vector<8x1xf32> to vector<8x32xf32>
    %13 = arith.subf %3, %12 : vector<8x32xf32>
    %14 = arith.mulf %13, %13 : vector<8x32xf32>
    %cst_9 = arith.constant dense<0.000000e+00> : vector<8xf32>
    %15 = vector.multi_reduction <add>, %14, %cst_9 [1] : vector<8x32xf32> to vector<8xf32>
    %16 = vector.shape_cast %15 : vector<8xf32> to vector<8x1xf32>
    %cst_10 = arith.constant 3.200000e+01 : f32
    %17 = vector.broadcast %cst_10 : f32 to vector<8x1xf32>
    %18 = arith.divf %16, %17 : vector<8x1xf32>
    %19 = vector.broadcast %11 : vector<8x1xf32> to vector<8x32xf32>
    %20 = arith.subf %3, %19 : vector<8x32xf32>
    %cst_11 = arith.constant 9.99999974E-6 : f32
    %21 = vector.broadcast %cst_11 : f32 to vector<8x1xf32>
    %22 = arith.addf %18, %21 : vector<8x1xf32>
    %23 = math.rsqrt %22 : vector<8x1xf32>
    %24 = vector.broadcast %23 : vector<8x1xf32> to vector<8x32xf32>
    %25 = arith.mulf %20, %24 : vector<8x32xf32>
    %26 = vector.broadcast %5 : vector<1x32xf32> to vector<8x32xf32>
    %27 = arith.mulf %25, %26 : vector<8x32xf32>
    %28 = vector.broadcast %7 : vector<1x32xf32> to vector<8x32xf32>
    %29 = arith.addf %27, %28 : vector<8x32xf32>
    %30 = arith.truncf %29 : vector<8x32xf32> to vector<8x32xbf16>
    %c0_12 = arith.constant 0 : index
    %c0_13 = arith.constant 0 : index
    %c0_14 = arith.constant 0 : index
    %31 = vector.load %arg7[%c0_12, %c0_13, %c0_14] : memref<1x32x96xbf16, #tpu.memory_space<vmem>>, vector<1x32x96xbf16>
    %32 = vector.shape_cast %31 : vector<1x32x96xbf16> to vector<32x96xbf16>
    %cst_15 = arith.constant dense<0.000000e+00> : vector<8x96xf32>
    %33 = tpu.matmul %30, %32, %cst_15 {dimension_numbers = #tpu.dot_dimension_numbers<[1], [0], [0], [1], [0, 0, 1, 1], [], []>} : vector<8x32xbf16>, vector<32x96xbf16>, vector<8x96xf32> -> vector<8x96xf32>
    %34 = vector.extract_strided_slice %33 {offsets = [0, 0], sizes = [8, 32], strides = [1, 1]} : vector<8x96xf32> to vector<8x32xf32>
    %35 = vector.shape_cast %34 : vector<8x32xf32> to vector<8x4x8xf32>
    %36 = vector.extract_strided_slice %33 {offsets = [0, 32], sizes = [8, 32], strides = [1, 1]} : vector<8x96xf32> to vector<8x32xf32>
    %37 = vector.shape_cast %36 : vector<8x32xf32> to vector<8x4x8xf32>
    %38 = vector.extract_strided_slice %33 {offsets = [0, 64], sizes = [8, 32], strides = [1, 1]} : vector<8x96xf32> to vector<8x32xf32>
    %39 = vector.shape_cast %38 : vector<8x32xf32> to vector<8x4x8xf32>
    %40 = arith.truncf %35 : vector<8x4x8xf32> to vector<8x4x8xbf16>
    %41 = arith.truncf %37 : vector<8x4x8xf32> to vector<8x4x8xbf16>
    "tpu.trace_start"() <{level = 10 : i32, message = "qhd,khd->hqk"}> : () -> ()
    %cst_16 = arith.constant dense<0.000000e+00> : vector<4x8x8xf32>
    %42 = tpu.matmul %40, %41, %cst_16 {dimension_numbers = #tpu.dot_dimension_numbers<[2], [2], [0], [0], [0, 1, 0, 0, 1, 0], [1], [1]>} : vector<8x4x8xbf16>, vector<8x4x8xbf16>, vector<4x8x8xf32> -> vector<4x8x8xf32>
    "tpu.trace_stop"() : () -> ()
    %43 = tpu.iota {dimensions = array<i32: 0>} : vector<8x8xi32>
    %44 = tpu.iota {dimensions = array<i32: 1>} : vector<8x8xi32>
    %45 = arith.cmpi sge, %43, %44 : vector<8x8xi32>
    %46 = vector.shape_cast %45 : vector<8x8xi1> to vector<1x8x8xi1>
    %cst_17 = arith.constant -1.000000e+30 : f32
    %47 = vector.shape_cast %46 : vector<1x8x8xi1> to vector<1x8x8xi1>
    %48 = vector.broadcast %47 : vector<1x8x8xi1> to vector<4x8x8xi1>
    %49 = vector.broadcast %cst_17 : f32 to vector<4x8x8xf32>
    %50 = arith.select %48, %42, %49 : vector<4x8x8xi1>, vector<4x8x8xf32>
    %cst_18 = arith.constant dense<0xFF800000> : vector<4x8xf32>
    %51 = vector.multi_reduction <maximumf>, %50, %cst_18 [2] : vector<4x8x8xf32> to vector<4x8xf32>
    %52 = vector.shape_cast %51 : vector<4x8xf32> to vector<4x8x1xf32>
    %53 = vector.broadcast %52 : vector<4x8x1xf32> to vector<4x8x8xf32>
    %54 = arith.subf %50, %53 : vector<4x8x8xf32>
    %55 = math.exp %54 : vector<4x8x8xf32>
    %cst_19 = arith.constant dense<0.000000e+00> : vector<4x8xf32>
    %56 = vector.multi_reduction <add>, %55, %cst_19 [2] : vector<4x8x8xf32> to vector<4x8xf32>
    %57 = vector.shape_cast %56 : vector<4x8xf32> to vector<4x8x1xf32>
    %58 = tpu.reciprocal %57 {approx = true} : vector<4x8x1xf32> -> vector<4x8x1xf32>
    %59 = vector.broadcast %58 : vector<4x8x1xf32> to vector<4x8x8xf32>
    %60 = arith.mulf %55, %59 : vector<4x8x8xf32>
    %61 = arith.truncf %60 : vector<4x8x8xf32> to vector<4x8x8xbf16>
    %62 = arith.truncf %39 : vector<8x4x8xf32> to vector<8x4x8xbf16>
    "tpu.trace_start"() <{level = 10 : i32, message = "hqk,khd->qhd"}> : () -> ()
    %cst_20 = arith.constant dense<0.000000e+00> : vector<4x8x8xf32>
    %63 = tpu.matmul %62, %61, %cst_20 {dimension_numbers = #tpu.dot_dimension_numbers<[0], [2], [2], [1], [0, 1, 0, 2, 1, 1], [1], [0]>} : vector<8x4x8xbf16>, vector<4x8x8xbf16>, vector<4x8x8xf32> -> vector<4x8x8xf32>
    %64 = tpu.transpose %63, [2, 0, 1] : vector<4x8x8xf32> -> vector<8x4x8xf32>
    "tpu.trace_stop"() : () -> ()
    %65 = vector.shape_cast %64 : vector<8x4x8xf32> to vector<8x32xf32>
    %66 = arith.truncf %65 : vector<8x32xf32> to vector<8x32xbf16>
    %c0_21 = arith.constant 0 : index
    %c0_22 = arith.constant 0 : index
    %c0_23 = arith.constant 0 : index
    %67 = vector.load %arg8[%c0_21, %c0_22, %c0_23] : memref<1x32x32xbf16, #tpu.memory_space<vmem>>, vector<1x32x32xbf16>
    %68 = vector.shape_cast %67 : vector<1x32x32xbf16> to vector<32x32xbf16>
    %cst_24 = arith.constant dense<0.000000e+00> : vector<8x32xf32>
    %69 = tpu.matmul %66, %68, %cst_24 {dimension_numbers = #tpu.dot_dimension_numbers<[1], [0], [0], [1], [0, 0, 1, 1], [], []>} : vector<8x32xbf16>, vector<32x32xbf16>, vector<8x32xf32> -> vector<8x32xf32>
    %c0_25 = arith.constant 0 : index
    %c0_26 = arith.constant 0 : index
    %c0_27 = arith.constant 0 : index
    %70 = vector.load %arg9[%c0_25, %c0_26, %c0_27] : memref<1x1x32xf32, #tpu.memory_space<vmem>>, vector<1x1x32xf32>
    %71 = vector.shape_cast %70 : vector<1x1x32xf32> to vector<1x32xf32>
    %72 = vector.broadcast %71 : vector<1x32xf32> to vector<8x32xf32>
    %73 = arith.addf %69, %72 : vector<8x32xf32>
    %74 = arith.addf %3, %73 : vector<8x32xf32>
    %c0_28 = arith.constant 0 : index
    %c0_29 = arith.constant 0 : index
    %c0_30 = arith.constant 0 : index
    %75 = vector.load %arg10[%c0_28, %c0_29, %c0_30] : memref<1x1x32xf32, #tpu.memory_space<vmem>>, vector<1x1x32xf32>
    %76 = vector.shape_cast %75 : vector<1x1x32xf32> to vector<1x32xf32>
    %c0_31 = arith.constant 0 : index
    %c0_32 = arith.constant 0 : index
    %c0_33 = arith.constant 0 : index
    %77 = vector.load %arg11[%c0_31, %c0_32, %c0_33] : memref<1x1x32xf32, #tpu.memory_space<vmem>>, vector<1x1x32xf32>
    %78 = vector.shape_cast %77 : vector<1x1x32xf32> to vector<1x32xf32>
    %cst_34 = arith.constant dense<0.000000e+00> : vector<8xf32>
    %79 = vector.multi_reduction <add>, %74, %cst_34 [1] : vector<8x32xf32> to vector<8xf32>
    %80 = vector.shape_cast %79 : vector<8xf32> to vector<8x1xf32>
    %cst_35 = arith.constant 3.200000e+01 : f32
    %81 = vector.broadcast %cst_35 : f32 to vector<8x1xf32>
    %82 = arith.divf %80, %81 : vector<8x1xf32>
    %83 = vector.broadcast %82 : vector<8x1xf32> to vector<8x32xf32>
    %84 = arith.subf %74, %83 : vector<8x32xf32>
    %85 = arith.mulf %84, %84 : vector<8x32xf32>
    %cst_36 = arith.constant dense<0.000000e+00> : vector<8xf32>
    %86 = vector.multi_reduction <add>, %85, %cst_36 [1] : vector<8x32xf32> to vector<8xf32>
    %87 = vector.shape_cast %86 : vector<8xf32> to vector<8x1xf32>
    %cst_37 = arith.constant 3.200000e+01 : f32
    %88 = vector.broadcast %cst_37 : f32 to vector<8x1xf32>
    %89 = arith.divf %87, %88 : vector<8x1xf32>
    %90 = vector.broadcast %82 : vector<8x1xf32> to vector<8x32xf32>
    %91 = arith.subf %74, %90 : vector<8x32xf32>
    %cst_38 = arith.constant 9.99999974E-6 : f32
    %92 = vector.broadcast %cst_38 : f32 to vector<8x1xf32>
    %93 = arith.addf %89, %92 : vector<8x1xf32>
    %94 = math.rsqrt %93 : vector<8x1xf32>
    %95 = vector.broadcast %94 : vector<8x1xf32> to vector<8x32xf32>
    %96 = arith.mulf %91, %95 : vector<8x32xf32>
    %97 = vector.broadcast %76 : vector<1x32xf32> to vector<8x32xf32>
    %98 = arith.mulf %96, %97 : vector<8x32xf32>
    %99 = vector.broadcast %78 : vector<1x32xf32> to vector<8x32xf32>
    %100 = arith.addf %98, %99 : vector<8x32xf32>
    %101 = arith.truncf %100 : vector<8x32xf32> to vector<8x32xbf16>
    %c0_39 = arith.constant 0 : index
    %c0_40 = arith.constant 0 : index
    %c0_41 = arith.constant 0 : index
    %102 = vector.load %arg12[%c0_39, %c0_40, %c0_41] : memref<1x32x128xbf16, #tpu.memory_space<vmem>>, vector<1x32x128xbf16>
    %103 = vector.shape_cast %102 : vector<1x32x128xbf16> to vector<32x128xbf16>
    %cst_42 = arith.constant dense<0.000000e+00> : vector<8x128xf32>
    %104 = tpu.matmul %101, %103, %cst_42 {dimension_numbers = #tpu.dot_dimension_numbers<[1], [0], [0], [1], [0, 0, 1, 1], [], []>} : vector<8x32xbf16>, vector<32x128xbf16>, vector<8x128xf32> -> vector<8x128xf32>
    %c0_43 = arith.constant 0 : index
    %c0_44 = arith.constant 0 : index
    %c0_45 = arith.constant 0 : index
    %105 = vector.load %arg13[%c0_43, %c0_44, %c0_45] : memref<1x1x128xf32, #tpu.memory_space<vmem>>, vector<1x1x128xf32>
    %106 = vector.shape_cast %105 : vector<1x1x128xf32> to vector<1x128xf32>
    %107 = vector.broadcast %106 : vector<1x128xf32> to vector<8x128xf32>
    %108 = arith.addf %104, %107 : vector<8x128xf32>
    %cst_46 = arith.constant 0.000000e+00 : f32
    %109 = vector.broadcast %cst_46 : f32 to vector<8x128xf32>
    %110 = arith.maximumf %108, %109 : vector<8x128xf32>
    %111 = arith.truncf %110 : vector<8x128xf32> to vector<8x128xbf16>
    %c0_47 = arith.constant 0 : index
    %c0_48 = arith.constant 0 : index
    %c0_49 = arith.constant 0 : index
    %112 = vector.load %arg14[%c0_47, %c0_48, %c0_49] : memref<1x128x32xbf16, #tpu.memory_space<vmem>>, vector<1x128x32xbf16>
    %113 = vector.shape_cast %112 : vector<1x128x32xbf16> to vector<128x32xbf16>
    %cst_50 = arith.constant dense<0.000000e+00> : vector<8x32xf32>
    %114 = tpu.matmul %111, %113, %cst_50 {dimension_numbers = #tpu.dot_dimension_numbers<[1], [0], [0], [1], [0, 0, 1, 1], [], []>} : vector<8x128xbf16>, vector<128x32xbf16>, vector<8x32xf32> -> vector<8x32xf32>
    %c0_51 = arith.constant 0 : index
    %c0_52 = arith.constant 0 : index
    %c0_53 = arith.constant 0 : index
    %115 = vector.load %arg15[%c0_51, %c0_52, %c0_53] : memref<1x1x32xf32, #tpu.memory_space<vmem>>, vector<1x1x32xf32>
    %116 = vector.shape_cast %115 : vector<1x1x32xf32> to vector<1x32xf32>
    %117 = vector.broadcast %116 : vector<1x32xf32> to vector<8x32xf32>
    %118 = arith.addf %114, %117 : vector<8x32xf32>
    %119 = arith.addf %74, %118 : vector<8x32xf32>
    %c0_54 = arith.constant 0 : index
    %c0_55 = arith.constant 0 : index
    %120 = vector.load %arg21[%c0_54, %c0_55] : memref<8x32xf32, #tpu.memory_space<vmem>>, vector<8x32xf32>
    tpu.vector_store %arg21[%c0_54, %c0_55], %119 {strides = array<i32>} : memref<8x32xf32, #tpu.memory_space<vmem>>, vector<8x32xf32>,
    %c1_i32 = arith.constant 1 : i32
    %121 = arith.cmpi eq, %arg1, %c1_i32 : i32
    %122 = arith.extui %121 : i1 to i32
    %c0_i32_56 = arith.constant 0 : i32
    %123 = arith.cmpi ne, %122, %c0_i32_56 : i32
    scf.if %123 {
      %c0_57 = arith.constant 0 : index
      %c0_58 = arith.constant 0 : index
      %124 = vector.load %arg16[%c0_57, %c0_58] : memref<1x32xf32, #tpu.memory_space<vmem>>, vector<1x32xf32>
      %c0_59 = arith.constant 0 : index
      %c0_60 = arith.constant 0 : index
      %125 = vector.load %arg17[%c0_59, %c0_60] : memref<1x32xf32, #tpu.memory_space<vmem>>, vector<1x32xf32>
      %cst_61 = arith.constant dense<0.000000e+00> : vector<8xf32>
      %126 = vector.multi_reduction <add>, %119, %cst_61 [1] : vector<8x32xf32> to vector<8xf32>
      %127 = vector.shape_cast %126 : vector<8xf32> to vector<8x1xf32>
      %cst_62 = arith.constant 3.200000e+01 : f32
      %128 = vector.broadcast %cst_62 : f32 to vector<8x1xf32>
      %129 = arith.divf %127, %128 : vector<8x1xf32>
      %130 = vector.broadcast %129 : vector<8x1xf32> to vector<8x32xf32>
      %131 = arith.subf %119, %130 : vector<8x32xf32>
      %132 = arith.mulf %131, %131 : vector<8x32xf32>
      %cst_63 = arith.constant dense<0.000000e+00> : vector<8xf32>
      %133 = vector.multi_reduction <add>, %132, %cst_63 [1] : vector<8x32xf32> to vector<8xf32>
      %134 = vector.shape_cast %133 : vector<8xf32> to vector<8x1xf32>
      %cst_64 = arith.constant 3.200000e+01 : f32
      %135 = vector.broadcast %cst_64 : f32 to vector<8x1xf32>
      %136 = arith.divf %134, %135 : vector<8x1xf32>
      %137 = vector.broadcast %129 : vector<8x1xf32> to vector<8x32xf32>
      %138 = arith.subf %119, %137 : vector<8x32xf32>
      %cst_65 = arith.constant 9.99999974E-6 : f32
      %139 = vector.broadcast %cst_65 : f32 to vector<8x1xf32>
      %140 = arith.addf %136, %139 : vector<8x1xf32>
      %141 = math.rsqrt %140 : vector<8x1xf32>
      %142 = vector.broadcast %141 : vector<8x1xf32> to vector<8x32xf32>
      %143 = arith.mulf %138, %142 : vector<8x32xf32>
      %144 = vector.broadcast %124 : vector<1x32xf32> to vector<8x32xf32>
      %145 = arith.mulf %143, %144 : vector<8x32xf32>
      %146 = vector.broadcast %125 : vector<1x32xf32> to vector<8x32xf32>
      %147 = arith.addf %145, %146 : vector<8x32xf32>
      %148 = arith.truncf %147 : vector<8x32xf32> to vector<8x32xbf16>
      %c0_66 = arith.constant 0 : index
      %c0_67 = arith.constant 0 : index
      %149 = vector.load %arg18[%c0_66, %c0_67] : memref<32x128xbf16, #tpu.memory_space<vmem>>, vector<32x128xbf16>
      %cst_68 = arith.constant dense<0.000000e+00> : vector<8x128xf32>
      %150 = tpu.matmul %148, %149, %cst_68 {dimension_numbers = #tpu.dot_dimension_numbers<[1], [0], [0], [1], [0, 0, 1, 1], [], []>} : vector<8x32xbf16>, vector<32x128xbf16>, vector<8x128xf32> -> vector<8x128xf32>
      %c0_69 = arith.constant 0 : index
      %c0_70 = arith.constant 0 : index
      %151 = vector.load %arg19[%c0_69, %c0_70] : memref<1x128xf32, #tpu.memory_space<vmem>>, vector<1x128xf32>
      %152 = vector.broadcast %151 : vector<1x128xf32> to vector<8x128xf32>
      %153 = arith.addf %150, %152 : vector<8x128xf32>
      %154 = vector.shape_cast %153 : vector<8x128xf32> to vector<1x8x128xf32>
      %c0_71 = arith.constant 0 : index
      %c0_72 = arith.constant 0 : index
      %c0_73 = arith.constant 0 : index
      %155 = vector.load %arg20[%c0_71, %c0_72, %c0_73] : memref<1x8x128xf32, #tpu.memory_space<vmem>>, vector<1x8x128xf32>
      tpu.vector_store %arg20[%c0_71, %c0_72, %c0_73], %154 {strides = array<i32>} : memref<1x8x128xf32, #tpu.memory_space<vmem>>, vector<1x8x128xf32>,
    } else {
    }
    return
  }
  func.func @transform_0(%arg0: i32, %arg1: i32) -> (i32, i32, i32) {
    %c0_i32 = arith.constant 0 : i32
    %c0_i32_0 = arith.constant 0 : i32
    %c0_i32_1 = arith.constant 0 : i32
    return %arg0, %c0_i32, %c0_i32_0 : i32, i32, i32
  }
  func.func @transform_1(%arg0: i32, %arg1: i32) -> (i32, i32) {
    %c0_i32 = arith.constant 0 : i32
    %c0_i32_0 = arith.constant 0 : i32
    %c0_i32_1 = arith.constant 0 : i32
    return %c0_i32, %c0_i32_0 : i32, i32
  }
  func.func @transform_2(%arg0: i32, %arg1: i32) -> (i32, i32) {
    %c0_i32 = arith.constant 0 : i32
    %c0_i32_0 = arith.constant 0 : i32
    %c0_i32_1 = arith.constant 0 : i32
    return %c0_i32, %c0_i32_0 : i32, i32
  }
  func.func @transform_3(%arg0: i32, %arg1: i32) -> (i32, i32, i32) {
    %c0_i32 = arith.constant 0 : i32
    %c0_i32_0 = arith.constant 0 : i32
    %c0_i32_1 = arith.constant 0 : i32
    return %arg1, %c0_i32, %c0_i32_0 : i32, i32, i32
  }
  func.func @transform_4(%arg0: i32, %arg1: i32) -> (i32, i32, i32) {
    %c0_i32 = arith.constant 0 : i32
    %c0_i32_0 = arith.constant 0 : i32
    %c0_i32_1 = arith.constant 0 : i32
    return %arg1, %c0_i32, %c0_i32_0 : i32, i32, i32
  }
  func.func @transform_5(%arg0: i32, %arg1: i32) -> (i32, i32, i32) {
    %c0_i32 = arith.constant 0 : i32
    %c0_i32_0 = arith.constant 0 : i32
    %c0_i32_1 = arith.constant 0 : i32
    return %arg1, %c0_i32, %c0_i32_0 : i32, i32, i32
  }
  func.func @transform_6(%arg0: i32, %arg1: i32) -> (i32, i32, i32) {
    %c0_i32 = arith.constant 0 : i32
    %c0_i32_0 = arith.constant 0 : i32
    %c0_i32_1 = arith.constant 0 : i32
    return %arg1, %c0_i32, %c0_i32_0 : i32, i32, i32
  }
  func.func @transform_7(%arg0: i32, %arg1: i32) -> (i32, i32, i32) {
    %c0_i32 = arith.constant 0 : i32
    %c0_i32_0 = arith.constant 0 : i32
    %c0_i32_1 = arith.constant 0 : i32
    return %arg1, %c0_i32, %c0_i32_0 : i32, i32, i32
  }
  func.func @transform_8(%arg0: i32, %arg1: i32) -> (i32, i32, i32) {
    %c0_i32 = arith.constant 0 : i32
    %c0_i32_0 = arith.constant 0 : i32
    %c0_i32_1 = arith.constant 0 : i32
    return %arg1, %c0_i32, %c0_i32_0 : i32, i32, i32
  }
  func.func @transform_9(%arg0: i32, %arg1: i32) -> (i32, i32, i32) {
    %c0_i32 = arith.constant 0 : i32
    %c0_i32_0 = arith.constant 0 : i32
    %c0_i32_1 = arith.constant 0 : i32
    return %arg1, %c0_i32, %c0_i32_0 : i32, i32, i32
  }
  func.func @transform_10(%arg0: i32, %arg1: i32) -> (i32, i32, i32) {
    %c0_i32 = arith.constant 0 : i32
    %c0_i32_0 = arith.constant 0 : i32
    %c0_i32_1 = arith.constant 0 : i32
    return %arg1, %c0_i32, %c0_i32_0 : i32, i32, i32
  }
  func.func @transform_11(%arg0: i32, %arg1: i32) -> (i32, i32, i32) {
    %c0_i32 = arith.constant 0 : i32
    %c0_i32_0 = arith.constant 0 : i32
    %c0_i32_1 = arith.constant 0 : i32
    return %arg1, %c0_i32, %c0_i32_0 : i32, i32, i32
  }
  func.func @transform_12(%arg0: i32, %arg1: i32) -> (i32, i32, i32) {
    %c0_i32 = arith.constant 0 : i32
    %c0_i32_0 = arith.constant 0 : i32
    %c0_i32_1 = arith.constant 0 : i32
    return %arg1, %c0_i32, %c0_i32_0 : i32, i32, i32
  }
  func.func @transform_13(%arg0: i32, %arg1: i32) -> (i32, i32, i32) {
    %c0_i32 = arith.constant 0 : i32
    %c0_i32_0 = arith.constant 0 : i32
    %c0_i32_1 = arith.constant 0 : i32
    return %arg1, %c0_i32, %c0_i32_0 : i32, i32, i32
  }
  func.func @transform_14(%arg0: i32, %arg1: i32) -> (i32, i32) {
    %c0_i32 = arith.constant 0 : i32
    %c0_i32_0 = arith.constant 0 : i32
    %c0_i32_1 = arith.constant 0 : i32
    return %c0_i32, %c0_i32_0 : i32, i32
  }
  func.func @transform_15(%arg0: i32, %arg1: i32) -> (i32, i32) {
    %c0_i32 = arith.constant 0 : i32
    %c0_i32_0 = arith.constant 0 : i32
    %c0_i32_1 = arith.constant 0 : i32
    return %c0_i32, %c0_i32_0 : i32, i32
  }
  func.func @transform_16(%arg0: i32, %arg1: i32) -> (i32, i32) {
    %c0_i32 = arith.constant 0 : i32
    %c0_i32_0 = arith.constant 0 : i32
    %c0_i32_1 = arith.constant 0 : i32
    return %c0_i32, %c0_i32_0 : i32, i32
  }
  func.func @transform_17(%arg0: i32, %arg1: i32) -> (i32, i32) {
    %c0_i32 = arith.constant 0 : i32
    %c0_i32_0 = arith.constant 0 : i32
    %c0_i32_1 = arith.constant 0 : i32
    return %c0_i32, %c0_i32_0 : i32, i32
  }
  func.func @transform_18(%arg0: i32, %arg1: i32) -> (i32, i32, i32) {
    %c0_i32 = arith.constant 0 : i32
    %c0_i32_0 = arith.constant 0 : i32
    %c0_i32_1 = arith.constant 0 : i32
    return %arg0, %c0_i32, %c0_i32_0 : i32, i32, i32
  }
}

</mosaic_0001>

<bundles_post_ra>
// kernel: tpu_custom_call.1
= control target key start
LH: loop header
LB: loop body
LE: loop exit
PB: predicated region body
PF: predicated region fallthrough
CT: control target
= control target key end

     0   :  { %s4262_s0 = inlined_call_operand.vmem [shape: s32[2,8,1], index: 0, kind: input, shape index: {}]   ;;  %s4263_s1 = inlined_call_operand.vmem [shape: f32[64,32], index: 1, kind: input, shape index: {}]   ;;  %s4264_s2 = inlined_call_operand.vmem [shape: f32[8,32], index: 2, kind: input, shape index: {}]   ;;  %s4265_s3 = inlined_call_operand.vmem [shape: f32[2,1,32], index: 3, kind: input, shape index: {}]   ;;  %s4266_s4 = inlined_call_operand.vmem [shape: f32[2,1,32], index: 4, kind: input, shape index: {}]   ;;  %s4267_s5 = inlined_call_operand.vmem [shape: bf16[2,32,96], index: 5, kind: input, shape index: {}]   ;;  %s4268_s6 = inlined_call_operand.vmem [shape: bf16[2,32,32], index: 6, kind: input, shape index: {}]   ;;  %s4269_s7 = inlined_call_operand.vmem [shape: f32[2,1,32], index: 7, kind: input, shape index: {}]   ;;  %s4270_s8 = inlined_call_operand.vmem [shape: f32[2,1,32], index: 8, kind: input, shape index: {}]   ;;  %s4271_s9 = inlined_call_operand.vmem [shape: f32[2,1,32], index: 9, kind: input, shape index: {}]   ;;  %s4272_s10 = inlined_call_operand.vmem [shape: bf16[2,32,128], index: 10, kind: input, shape index: {}]   ;;  %s4273_s11 = inlined_call_operand.vmem [shape: f32[2,1,128], index: 11, kind: input, shape index: {}]   ;;  %s4274_s12 = inlined_call_operand.vmem [shape: bf16[2,128,32], index: 12, kind: input, shape index: {}]   ;;  %s4275_s13 = inlined_call_operand.vmem [shape: f32[2,1,32], index: 13, kind: input, shape index: {}]   ;;  %s4276_s14 = inlined_call_operand.vmem [shape: f32[1,32], index: 14, kind: input, shape index: {}]   ;;  %s4277_s15 = inlined_call_operand.vmem [shape: f32[1,32], index: 15, kind: input, shape index: {}]   ;;  %s4278_s16 = inlined_call_operand.vmem [shape: bf16[32,128], index: 16, kind: input, shape index: {}]   ;;  %s4279_s17 = inlined_call_operand.vmem [shape: f32[1,128], index: 17, kind: input, shape index: {}]   ;;  %s4280_s18 = inlined_call_operand.hbm [shape: f32[2,8,128], index: 18, kind: output, shape index: {}]  }
   0x1   :  { %4298 = sst [smem:[#allocation19_spill]] %s4262_s0 }
   0x2   :  { %4299 = sst [smem:[#allocation20_spill]] %s4263_s1 }
   0x3   :  { %4300 = sst [smem:[#allocation21_spill]] %s4264_s2 }
   0x4   :  { %4301 = sst [smem:[#allocation22_spill]] %s4267_s5 }
   0x5   :  { %4302 = sst [smem:[#allocation23_spill]] %s4268_s6 }
   0x6   :  { %4303 = sst [smem:[#allocation24_spill]] %s4276_s14 }
   0x7   :  { %4304 = sst [smem:[#allocation25_spill]] %s4277_s15 }
   0x8   :  { %4305 = sst [smem:[#allocation26_spill]] %s4278_s16 }
   0x9   :  { %4306 = sst [smem:[#allocation27_spill]] %s4279_s17 }
   0xa   :  { %4307 = sst [smem:[#allocation28_spill]] %s4280_s18 }
   0xb   :  { %23 = vsyncpa [#allocation4], 0 }
   0xc   :  { %25 = vsyncpa [#allocation4 + $0x1], 0  ;;  %s3633_s27 = smov 0   ;;  %s3635_s28 = smov 0  }
   0xd   :  { %s3637_s29 = smov 0   ;;  %s3639_s30 = smov 0  }
   0xe   :  { %s3641_s0 = smov 0   ;;  %s3643_s19 = smov 0  }
   0xf   :  { %s3645_s1 = smov 0   ;;  %s3647_s20 = smov 0  }
  0x10 LB: > { %4308 = sst [smem:[#allocation6_spill]] %s3495_s27  ;;  %s3104_s21 = sadd.s32 4294967295, %s3523_s20   ;;  %s3523_s20 = sphi %s3647_s20, %s31_s20   ;;  %s3519_s1 = sphi %s3645_s1, %s4353_s1   ;;  %s3515_s19 = sphi %s3643_s19, %s4352_s19   ;;  %s3511_s0 = sphi %s3641_s0, %s4351_s0   ;;  %s3507_s30 = sphi %s3639_s30, %s4350_s30   ;;  %s3503_s29 = sphi %s3637_s29, %s4349_s29   ;;  %s3499_s28 = sphi %s3635_s28, %s4348_s28   ;;  %s3495_s27 = sphi %s3633_s27, %s4347_s27  }
  0x11   : > { %4309 = sst [smem:[#allocation7_spill]] %s3499_s28  ;;  %s3105_s22 = sadd.s32 4294967294, %s3523_s20  }
  0x12   : > { %4310 = sst [smem:[#allocation8_spill]] %s3503_s29  ;;  %s40_s2 = sadd.s32 1, %s3515_s19 }
  0x13   : > { %4311 = sst [smem:[#allocation9_spill]] %s3507_s30  ;;  %p41_p0 = scmp.ge.s32.totalorder %s40_s2, 2 }
  0x14   : > { %4312 = sst [smem:[#allocation10_spill]] %s3511_s0  ;;  %s43_s23 = sadd.s32 1, %s3519_s1 }
  0x15   : > { %4313 = sst [smem:[#allocation11_spill]] %s3515_s19  ;;  %p498_p1 = scmp.ne.s32.totalorder %s3503_s29, %s3499_s28 }
  0x16   : > { %4314 = sst [smem:[#allocation12_spill]] %s3519_s1  ;;  %p499_p2 = scmp.eq.s32.totalorder %s3104_s21, 3 }
  0x17   : > { %4315 = sst [smem:[#allocation13_spill]] %s3523_s20  ;;  %s4355_s2 = smov (%p41_p0, %s40_s2), 0 }
  0x18   : > { %4316 = sst [smem:[#allocation14_spill]] %s4355_s2  ;;  %s4357_s23 = smov (!%p41_p0, %s43_s23), %s3519_s1 }
  0x19   : > { %p3682_p3 = por %p499_p2, %p498_p1  ;;  %p504_p4 = scmp.ne.s32.totalorder %s3499_s28, %s3495_s27 }
  0x1a   : > { %p45_p5 = scmp.ge.s32.totalorder %s4357_s23, 2  ;;  %p505_p6 = scmp.eq.s32.totalorder %s3105_s22, 3 }
  0x1b   : > { %s4317_s24 = scalar_select %p3682_p3, 1, 0 }
  0x1c   : > { %p3108_p7 = scmp.ge.s32.totalorder %s3523_s20, 1  ;;  %p622_p8 = scmp.lt.s32.totalorder %s3523_s20, 5 }
  0x1d   : > { %4318 = sst [smem:[#allocation15_spill]] %s4317_s24  ;;  %s4359_s23 = smov (%p45_p5, %s4357_s23), 0 }
  0x1e   : > { %4319 = sst [smem:[#allocation16_spill]] %s4359_s23  ;;  %p3692_p9 = por %p505_p6, %p504_p4 }
  0x1f   : > { %p623_p10 = pnand %p3108_p7, %p622_p8  ;;  %s485_s26 = ssub.s32 %s3519_s1, %s4359_s23 }
  0x20   : > { %s4320_s25 = scalar_select %p3692_p9, 1, 0 }
  0x21   : > { %s488_s21 = sadd.s32 1, %s3503_s29  ;;  %p486_p11 = scmp.eq.s32.totalorder %s485_s26, 0 }
  0x22   : > { %4321 = sst [smem:[#allocation17_spill]] %s4320_s25  ;;  %626 = sbr.rel (%p623_p10) target bundleno = 3521 (0xdc1), region = 92 }
  0x23   : > { %s3700_s2 = scalar_select %p486_p11, %s3503_s29, %s488_s21  }
  0x24   : > { %s4287_s22 = sand.u32 (!%p623_p10), 1, %s3499_s28   ;;  %p716_p12 = scmp.lt.s32.totalorder (!%p623_p10), %s3511_s0, 1 }
  0x25   : > { %4322 = sst [smem:[#allocation18_spill]] %s3700_s2  ;;  %s3706_s19 = sshll.u32 (!%p623_p10), %s4287_s22, 3 }
  0x26   : > { %p720_p13 = scmp.lt.s32.totalorder (!%p623_p10), %s3507_s30, 1  ;;  %s4323_s1 = sld [smem:[#allocation19_spill]] (!%p623_p10) }
  0x27   : > { %s717_s25 = scalar_select %p716_p12, %s3511_s0, 1 }
  0x28   : > { %s3711_s27 = scalar_select %p720_p13, %s3507_s30, 1 }
  0x29   : > { %s3110_s26 = sshll.u32 %s717_s25, 3  ;;  %s4324_s5 = sld [smem:[#allocation22_spill]] }
  0x2a   : > { %s3205_s0 = sshll.u32 %s3711_s27, 4  ;;  %s4325_s6 = sld [smem:[#allocation23_spill]] }
  0x2b   : > { %s741_s18 = scalar_lea.vmem %s4270_s8, %s3711_s27  ;;  %s3750_s20 = scalar_lea.vmem %s4272_s10, %s3205_s0 }
  0x2c   : > { %s719_s22 = scalar_lea.vmem %s4323_s1, %s3110_s26  ;;  %s760_s24 = scalar_lea.vmem %s4275_s13, %s3711_s27 }
  0x2d   : > { %s715_s21 = scalar_lea.vmem [#allocation3], %s3706_s19  ;;  %s4326_s28 = sld [smem:[#allocation9_spill]] }
  0x2f   : > { %s3728_s14 = scalar_lea.vmem %s4324_s5, %s3205_s0  ;;  %s752_s5 = scalar_lea.vmem %s4273_s11, %s3711_s27 }
  0x30   : > { %s3733_s30 = scalar_lea.vmem %s4325_s6, %s3205_s0  ;;  %s3208_s6 = sshll.u32 %s3711_s27, 6 }
  0x31   : > { %s3760_s29 = scalar_lea.vmem %s4274_s12, %s3208_s6 }
  0x33   : > { %p3119_p0 = scmp.ne.s32.totalorder %s4326_s28, 0 }
  0x34   : > { %s4327_s17 = sld [smem:[#allocation20_spill]] (!%p3119_p0) }
  0x35   : > { %765 = sbr.rel (%p3119_p0) target bundleno = 325 (0x145), region = 96 }
  0x3a   : > { %v766_v0 = vld [vmem:[%s719_s22] sm:$0xff]  ;;  %v782_v1 = vld [vmem:[%s4327_s17 + $0x38] sm:$0xff]  ;;  %v781_v2 = vld [vmem:[%s4327_s17 + $0x30] sm:$0xff]  ;;  %v3525_v3 = vmov 0   ;;  %v767_v50 = vlaneseq  ;;  %vm784_vm0 = vcmask 523264   ;;  %v3526_v53 = vmov 0.0  }
  0x3b   : > { %3311 = vset.pattern.permute.xlu0 %v3525_v3  ;;  %v3774_v4 = vand.u32 4294901760, %v782_v1  ;;  %v3776_v5 = vand.u32 4294901760, %v781_v2  ;;  %v780_v6 = vld [vmem:[%s4327_s17 + $0x28] sm:$0xff]  ;;  %v779_v7 = vld [vmem:[%s4327_s17 + $0x20] sm:$0xff]  ;;  %v778_v8 = vld [vmem:[%s4327_s17 + $0x18] sm:$0xff]  ;;  %s4328_s22 = sld [smem:[#allocation21_spill]] }
  0x3c   : > { %770 = vperm.xlu0 %3311, %v766_v0   ;;  %v3787_v9 = vand.u32 4294901760, %v780_v6  ;;  %v3789_v10 = vand.u32 4294901760, %v779_v7  ;;  %v3791_v11 = vand.u32 4294901760, %v778_v8  ;;  %v777_v12 = vld [vmem:[%s4327_s17 + $0x10] sm:$0xff]  ;;  %v776_v13 = vld [vmem:[%s4327_s17 + $0x8] sm:$0xff]  ;;  %v775_v14 = vld [vmem:[%s4327_s17] sm:$0xff] }
  0x3d   : > { %v3803_v15 = vsub.f32 %v782_v1, %v3774_v4  ;;  %v3806_v16 = vsub.f32 %v781_v2, %v3776_v5  ;;  %797 = vmatpush.msra.mxu0 %v3774_v4  ;;  %v3809_v17 = vand.u32 4294901760, %v777_v12  ;;  %v3811_v18 = vand.u32 4294901760, %v776_v13  ;;  %929 = vmatpush.msra.mxu3 %v3774_v4 }
  0x3e   : > { %v842_v19 = vsub.f32 %v780_v6, %v3787_v9  ;;  %v3816_v20 = vsub.f32 %v779_v7, %v3789_v10  ;;  %v3819_v21 = vsub.f32 %v778_v8, %v3791_v11  ;;  %v3821_v22 = vand.u32 4294901760, %v775_v14 }
  0x3f   : > { %v831_v23 = vand.u32 4294901760, %v3803_v15  ;;  %v837_v24 = vand.u32 4294901760, %v3806_v16  ;;  %v3826_v25 = vsub.f32 %v777_v12, %v3809_v17  ;;  %892 = vmatpush.msra.mxu2 %v3803_v15  ;;  %799 = vmatpush.msra.mxu0 %v3776_v5  ;;  %v866_v31 = vsub.f32 %v776_v13, %v3811_v18 }
  0x40   : > { %v843_v26 = vand.u32 4294901760, %v842_v19  ;;  %v849_v27 = vand.u32 4294901760, %v3816_v20  ;;  %931 = vmatpush.msra.mxu3 %v3776_v5  ;;  %v855_v30 = vand.u32 4294901760, %v3819_v21  ;;  %v872_v33 = vsub.f32 %v775_v14, %v3821_v22 }
  0x41   : > { %v832_v28 = vsub.f32 %v3803_v15, %v831_v23  ;;  %v838_v29 = vsub.f32 %v3806_v16, %v837_v24  ;;  %895 = vmatpush.msra.mxu2 %v3806_v16  ;;  %801 = vmatpush.msra.mxu0 %v3787_v9  ;;  %v861_v37 = vand.u32 4294901760, %v3826_v25  ;;  %v867_v40 = vand.u32 4294901760, %v866_v31  ;;  %v783_v60 = vld [vmem:[%s4328_s22] sm:$0xff] }
  0x42   : > { %v844_v32 = vsub.f32 %v842_v19, %v843_v26  ;;  %933 = vmatpush.msra.mxu3 %v3787_v9  ;;  %v850_v36 = vsub.f32 %v3816_v20, %v849_v27  ;;  %v856_v39 = vsub.f32 %v3819_v21, %v855_v30  ;;  %v873_v43 = vand.u32 4294901760, %v872_v33 }
  0x43   : > { %v833_v34 = vand.u32 4294901760, %v832_v28  ;;  %v839_v35 = vand.u32 4294901760, %v838_v29  ;;  %898 = vmatpush.msra.mxu2 %v842_v19  ;;  %803 = vmatpush.msra.mxu0 %v3789_v10  ;;  %v862_v42 = vsub.f32 %v3826_v25, %v861_v37  ;;  %v868_v45 = vsub.f32 %v866_v31, %v867_v40 }
  0x44   : > { %935 = vmatpush.msra.mxu3 %v3789_v10  ;;  %v845_v38 = vand.u32 4294901760, %v844_v32  ;;  %v851_v41 = vand.u32 4294901760, %v850_v36  ;;  %v857_v44 = vand.u32 4294901760, %v856_v39  ;;  %v874_v47 = vsub.f32 %v872_v33, %v873_v43 }
  0x45   : > { %834 = vmatpush.msra.mxu1 %v833_v34  ;;  %901 = vmatpush.msra.mxu2 %v3816_v20  ;;  %v863_v46 = vand.u32 4294901760, %v862_v42  ;;  %v869_v48 = vand.u32 4294901760, %v868_v45  ;;  %v768_v51 = vand.u32 127, %v767_v50  ;;  %vm1025_vm2 = vcmask 261120  }
  0x46   : > { %805 = vmatpush.msra.mxu0 %v3791_v11  ;;  %937 = vmatpush.msra.mxu3 %v3791_v11  ;;  %v875_v49 = vand.u32 4294901760, %v874_v47 }
  0x47   : > { %840 = vmatpush.msra.mxu1 %v839_v35  ;;  %904 = vmatpush.msra.mxu2 %v3819_v21 }
  0x48   : > { %807 = vmatpush.msra.mxu0 %v3809_v17  ;;  %939 = vmatpush.msra.mxu3 %v3809_v17 }
  0x49   : > { %846 = vmatpush.msra.mxu1 %v845_v38  ;;  %907 = vmatpush.msra.mxu2 %v3826_v25 }
  0x4a   : > { %809 = vmatpush.msra.mxu0 %v3811_v18  ;;  %941 = vmatpush.msra.mxu3 %v3811_v18 }
  0x4b   : > { %852 = vmatpush.msra.mxu1 %v851_v41  ;;  %910 = vmatpush.msra.mxu2 %v866_v31 }
  0x4c   : > { %811 = vmatpush.msra.mxu0 %v3821_v22  ;;  %943 = vmatpush.msra.mxu3 %v3821_v22 }
  0x4d   : > { %858 = vmatpush.msra.mxu1 %v857_v44  ;;  %913 = vmatpush.msra.mxu2 %v872_v33 }
  0x4e   : > { %962 = vmatpush.msrb.mxu0 %v831_v23 }
  0x4f   : > { %864 = vmatpush.msra.mxu1 %v863_v46 }
  0x50   : > { %966 = vmatpush.msrb.mxu0 %v837_v24 }
  0x51   : > { %870 = vmatpush.msra.mxu1 %v869_v48 }
  0x52   : > { %970 = vmatpush.msrb.mxu0 %v843_v26 }
  0x53   : > { %876 = vmatpush.msra.mxu1 %v875_v49 }
  0x54   : > { %974 = vmatpush.msrb.mxu0 %v849_v27 }
  0x55   : > { %1005 = vmatpush.msrb.mxu1 %v3774_v4 }
  0x56   : > { %978 = vmatpush.msrb.mxu0 %v855_v30 }
  0x57   : > { %1007 = vmatpush.msrb.mxu1 %v3776_v5 }
  0x58   : > { %982 = vmatpush.msrb.mxu0 %v861_v37 }
  0x59   : > { %1009 = vmatpush.msrb.mxu1 %v3787_v9 }
  0x5a   : > { %986 = vmatpush.msrb.mxu0 %v867_v40 }
  0x5b   : > { %1011 = vmatpush.msrb.mxu1 %v3789_v10 }
  0x5c   : > { %990 = vmatpush.msrb.mxu0 %v873_v43 }
  0x5d   : > { %1013 = vmatpush.msrb.mxu1 %v3791_v11 }
  0x5f   : > { %1015 = vmatpush.msrb.mxu1 %v3809_v17 }
  0x61   : > { %1017 = vmatpush.msrb.mxu1 %v3811_v18 }
  0x63   : > { %1019 = vmatpush.msrb.mxu1 %v3821_v22 }
  0xae   : > { %v771_v52 = vpop.permute.xlu0 %770 }
  0xaf   : > { %vm772_vm1 = vcmp.eq.s32.totalorder %v771_v52, %v768_v51 }
  0xb0   : > { %v3120_v54 = vsel %vm772_vm1, 1.0, %v3526_v53 }
  0xb1   : > { %3121 = vmatmul.msk.f32.vlgmr.msra.gmra.mxu1 %vm784_vm0, %v3120_v54  ;;  %v786_v55 = vsel %vm784_vm0, %v3120_v54, 0 }
  0xb2   : > { %v813_v56 = vsub.f32 %v786_v55, %v786_v55 }
  0xb4   : > { %916 = vmatmul.f32.vlgmr.msra.gmra.mxu2 %v813_v56  ;;  %v814_v57 = vand.u32 4294901760, %v813_v56 }
  0xb6   : > { %947 = vmatmul.f32.vlgmr.msra.gmra.mxu3 %v814_v57  ;;  %v815_v58 = vsub.f32 %v813_v56, %v814_v57 }
  0xb8   : > { %v816_v59 = vand.u32 4294901760, %v815_v58 }
  0xb9   : > { %3123 = vmatmul.msk.f32.vlgmr.msrb.gmra.mxu1 %vm784_vm0, %v3120_v54 }
  0xba   : > { %817 = vmatmul.f32.vlgmr.msra.gmra.mxu0 %v816_v59 }
  0xc2   : > { %3122 = vmatmul.msk.f32.vlgmr.msrb.gmra.mxu0 %vm784_vm0, %v3120_v54 }
 0x12e   : > { %v879_v61 = vpop.f32.mrf.mxu1 }
 0x136   : > { %v1022_v7 = vpop.f32.mrf.mxu1 }
 0x137   : > { %v818_v62 = vpop.f32.mrf.mxu0  ;;  %v917_v1 = vpop.f32.mrf.mxu2 }
 0x138   : > { %v819_v63 = vadd.f32 %v818_v62, %v783_v60 }
 0x139   : > { %v948_v3 = vpop.f32.mrf.mxu3 }
 0x13a   : > { %v880_v0 = vadd.f32 %v879_v61, %v819_v63 }
 0x13c   : > { %v918_v2 = vadd.f32 %v917_v1, %v880_v0 }
 0x13e   : > { %v949_v4 = vadd.f32 %v948_v3, %v918_v2 }
 0x13f   : > { %v993_v5 = vpop.f32.mrf.mxu0 }
 0x140   : > { %v994_v6 = vadd.f32 %v993_v5, %v949_v4 }
 0x142   : > { %v1023_v8 = vadd.f32 %v1022_v7, %v994_v6 }
 0x144   : > { %1026 = vst.msk [vmem:[#allocation2] sm:$0xff] %vm1025_vm2, %v1023_v8 }
 0x145 PF: > { %vm1030_vm3 = vcmask 261120   ;;  %v3527_v11 = vmov 32.0   ;;  %v3210_v23 = vld [vmem:[%s3728_s14 + $0x8] sm:$0xff]  ;;  %v3209_v24 = vld [vmem:[%s3728_s14] sm:$0xff]  ;;  %s4329_s14 = scalar_lea.vmem %s4265_s3, %s3711_s27  ;;  %s4330_s15 = scalar_lea.vmem %s4266_s4, %s3711_s27  ;;  %v3532_v51 = vmov 1983009808  }
 0x146   : > { %3401 = vrcp.f32 %v3527_v11  ;;  %1094 = vmatpush.bf16.msra.mxu0 %v3210_v23  ;;  %v3394_v34 = vld [vmem:[%s4329_s14] ss:$0 sm:$0xff]  ;;  %s3528_s16 = smov 112   ;;  %s3529_s25 = smov 120   ;;  %v1117_v52 = vunpack.c.l.s4 %v3532_v51  ;;  %vm1112_vm8 = vcmask 1047556   ;;  %vm1773_vm9 = vcmask 1043456  }
 0x147   : > { %v3395_v37 = vld [vmem:[%s4330_s15] ss:$0 sm:$0xff]  ;;  %s3530_s6 = smov 104   ;;  %s3531_s1 = smov 96   ;;  %v3533_v59 = vmov 1934713408  }
 0x148   : > { %v3908_v58 = vunpack.c.0.s8 %v1117_v52  ;;  %v1141_v60 = vunpack.c.l.s4 %v3533_v59  ;;  %s3534_s28 = smov 64   ;;  %vm1769_vm10 = vcmask 64512   ;;  %s3535_s22 = smov 24   ;;  %vm2637_vm12 = vcmask 130048  }
 0x149   : > { %s3536_s23 = smov 16   ;;  %s3537_s2 = smov 8   ;;  %vm2639_vm13 = vcmask 195584  }
 0x14a   : > { %1095 = vmatpush.bf16.msra.mxu0 %v3209_v24  ;;  %v3917_v8 = vunpack.c.0.s8 %v1141_v60  ;;  %s4331_s0 = scalar_lea.vmem %s4269_s7, %s3711_s27 }
 0x14b   : > { %v1027_v9 = vld [vmem:[#allocation2] sm:$0xff] }
 0x14c   : > { %v1031_v10 = vsel %vm1030_vm3, %v1027_v9, 0.0  ;;  %v3402_v12 = vpop.eup %3401 }
 0x14d   : > { %1032 = vadd.xlane.f32.xlu0 %v1031_v10  ;;  %v1035_v13 = vmul.f32 32.0, %v3402_v12  ;;  %vm1039_vm4 = vweird.f32 %v3402_v12 }
 0x14f   : > { %v1036_v14 = vsub.f32 1.0, %v1035_v13 }
 0x151   : > { %v1037_v15 = vmul.f32 %v3402_v12, %v1036_v14 }
 0x153   : > { %v1038_v16 = vadd.f32 %v3402_v12, %v1037_v15 }
 0x155   : > { %v3869_v17 = vsel %vm1039_vm4, %v3402_v12, %v1038_v16 }
 0x1c0   : > { %v1033_v18 = vpop.xlane.xlu0 %1032 }
 0x1c1   : > { %v1041_v19 = vmul.f32 %v3869_v17, %v1033_v18 }
 0x1c3   : > { %v1042_v20 = vsub.f32 %v1027_v9, %v1041_v19 }
 0x1c5   : > { %v1043_v21 = vmul.f32 %v1042_v20, %v1042_v20 }
 0x1c7   : > { %v1044_v22 = vsel %vm1030_vm3, %v1043_v21, 0.0 }
 0x1c8   : > { %1045 = vadd.xlane.f32.xlu0 %v1044_v22 }
 0x23b   : > { %v1046_v25 = vpop.xlane.xlu0 %1045 }
 0x23c   : > { %v1047_v26 = vmul.f32 %v1046_v25, %v3869_v17 }
 0x23e   : > { %v1048_v27 = vadd.f32 1e-05, %v1047_v26 }
 0x240   : > { %3403 = vrsqrt.f32 %v1048_v27  ;;  %vm1055_vm6 = vweird.f32 %v1048_v27 }
 0x246   : > { %v3404_v28 = vpop.eup %3403 }
 0x247   : > { %v1050_v29 = vmul.f32 %v3404_v28, %v1048_v27  ;;  %vm1056_vm5 = vweird.f32 %v3404_v28 }
 0x248   : > { %vm1057_vm7 = vmor %vm1055_vm6, %vm1056_vm5 }
 0x249   : > { %v1051_v30 = vmul.f32 %v3404_v28, %v1050_v29 }
 0x24b   : > { %v1052_v31 = vmul.f32 0.5, %v1051_v30 }
 0x24d   : > { %v1053_v32 = vsub.f32 1.5, %v1052_v31 }
 0x24f   : > { %v1054_v33 = vmul.f32 %v3404_v28, %v1053_v32 }
 0x251   : > { %v1058_v35 = vsel %vm1057_vm7, %v3404_v28, %v1054_v33 }
 0x252   : > { %v1059_v36 = vmul.f32 %v1058_v35, %v1042_v20 }
 0x254   : > { %v1063_v38 = vmul.f32 %v3394_v34, %v1059_v36 }
 0x256   : > { %v1067_v39 = vadd.f32 %v3395_v37, %v1063_v38 }
 0x258   : > { %v1068_v40 = vpack.c.bf16 %v1067_v39, %v1067_v39 }
 0x25a   : > { %3132 = vmatmul.msk.bf16.vlgmr.msra.gmra.mxu0 %vm1030_vm3, %v1068_v40 }
 0x2d7   : > { %v3887_v41 = vpop.f32.mrf.mxu0 }
 0x2d8   : > { %1105 = vrot.lane.b32.xlu2 %v3887_v41, %s3528_s16  ;;  %1102 = vrot.lane.b32.xlu1 %v3887_v41, %s3529_s25  ;;  %s4332_s25 = scalar_lea.vmem %s4271_s9, %s3711_s27 }
 0x2df   : > { %v1099_v42 = vpop.f32.mrf.mxu0 }
 0x2e0   : > { %1108 = vrot.lane.b32.xlu1 %v3887_v41, %s3530_s6 }
 0x332   : > { %v3899_v45 = vpop.permute.xlu2 %1105 }
 0x34a   : > { %v3892_v43 = vpop.permute.xlu1 %1102 }
 0x34b   : > { %v3896_v44 = vpack.i.bf16 %v3887_v41, %v3892_v43 }
 0x34d   : > { %3313 = vrot.lane.b32.xlu2 %v3896_v44, %s3531_s1 }
 0x352   : > { %v3901_v46 = vpop.permute.xlu1 %1108 }
 0x353   : > { %v3905_v47 = vpack.i.bf16 %v3899_v45, %v3901_v46 }
 0x355   : > { %3318 = vrot.lane.b32.xlu0 %v3905_v47, %s3531_s1 }
 0x3a7   : > { %v3314_v48 = vpop.permute.xlu2 %3313 }
 0x3a8   : > { %v3316_v49 = vunpack.i.h.bf16 %v3314_v48  ;;  %v3315_v50 = vunpack.i.l.bf16 %v3314_v48 }
 0x3aa   : > { %v1182_v54 = vrot.slane %v3316_v49, 4  ;;  %v1194_v55 = vrot.slane %v3315_v50, 4 }
 0x3c7   : > { %v3319_v53 = vpop.permute.xlu0 %3318 }
 0x3c8   : > { %v3321_v56 = vunpack.i.h.bf16 %v3319_v53  ;;  %v3320_v57 = vunpack.i.l.bf16 %v3319_v53 }
 0x3ca   : > { %v1180_v61 = vrot.slane %v3321_v56, 4  ;;  %v1183_v62 = vsel %vm1112_vm8, %v3321_v56, %v1182_v54  ;;  %v1192_v63 = vrot.slane %v3320_v57, 4  ;;  %v1195_v0 = vsel %vm1112_vm8, %v3320_v57, %v1194_v55 }
 0x3cb   : > { %v1191_v1 = vperm.slane %v1183_v62, %v3908_v58  ;;  %v1203_v2 = vperm.slane %v1195_v0, %v3908_v58 }
 0x3cc   : > { %v1181_v3 = vsel %vm1112_vm8, %v1180_v61, %v3316_v49  ;;  %v1193_v4 = vsel %vm1112_vm8, %v1192_v63, %v3315_v50 }
 0x3cd   : > { %v1218_v5 = vrot.slane %v1191_v1, 4  ;;  %v1199_v6 = vperm.slane %v1193_v4, %v3908_v58  ;;  %v1216_v7 = vrot.slane %v1203_v2, 4  ;;  %v1187_v9 = vperm.slane %v1181_v3, %v3908_v58 }
 0x3cf   : > { %v1204_v10 = vrot.slane %v1199_v6, 4  ;;  %v1219_v11 = vsel %vm1112_vm8, %v1203_v2, %v1218_v5  ;;  %v1217_v12 = vsel %vm1112_vm8, %v1216_v7, %v1191_v1  ;;  %v1206_v26 = vrot.slane %v1187_v9, 4 }
 0x3d0   : > { %v1227_v13 = vperm.slane %v1219_v11, %v3917_v8  ;;  %v1223_v14 = vperm.slane %v1217_v12, %v3917_v8 }
 0x3d1   : > { %v1205_v15 = vsel %vm1112_vm8, %v1204_v10, %v1187_v9  ;;  %v1207_v31 = vsel %vm1112_vm8, %v1199_v6, %v1206_v26 }
 0x3d2   : > { %v1234_v16 = vrot.slane %v1227_v13, 4  ;;  %v1232_v18 = vrot.slane %v1223_v14, 4  ;;  %v1211_v19 = vperm.slane %v1205_v15, %v3917_v8  ;;  %v1318_v22 = vpack.c.bf16 %v1227_v13, %v1227_v13 }
 0x3d3   : > { %v1316_v27 = vpack.c.bf16 %v1223_v14, %v1223_v14  ;;  %v1215_v32 = vperm.slane %v1207_v31, %v3917_v8 }
 0x3d4   : > { %v1235_v20 = vsel %vm1112_vm8, 0.0, %v1234_v16  ;;  %v1233_v21 = vsel %vm1112_vm8, 0.0, %v1232_v18  ;;  %v1228_v25 = vrot.slane %v1211_v19, 4  ;;  %v1312_v29 = vpack.c.bf16 %v1211_v19, %v1211_v19 }
 0x3d5   : > { %v1319_v23 = vpack.c.bf16 %v1235_v20, %v1235_v20  ;;  %v1317_v24 = vpack.c.bf16 %v1233_v21, %v1233_v21  ;;  %v1230_v33 = vrot.slane %v1215_v32, 4  ;;  %v1314_v35 = vpack.c.bf16 %v1215_v32, %v1215_v32 }
 0x3d6   : > { %v1229_v28 = vsel %vm1112_vm8, 0.0, %v1228_v25 }
 0x3d7   : > { %3325 = vxpose.binary.xlu0.c.b16.start.end [1/2] (short) (narrow) %v1319_v23, %v1318_v22, 16  ;;  %v1313_v30 = vpack.c.bf16 %v1229_v28, %v1229_v28  ;;  %v1231_v34 = vsel %vm1112_vm8, 0.0, %v1230_v33 }
 0x3d8   : > { %3322 = vxpose.binary.xlu1.c.b16.start.end [1/2] (short) (narrow) %v1317_v24, %v1316_v27, 16  ;;  %v1315_v36 = vpack.c.bf16 %v1231_v34, %v1231_v34 }
 0x3d9   : > { %3328 = vxpose.binary.xlu2.c.b16.start.end [1/2] (short) (narrow) %v1313_v30, %v1312_v29, 16 }
 0x3e9   : > { %3331 = vxpose.binary.xlu2.c.b16.start.end [1/2] (short) (narrow) %v1315_v36, %v1314_v35, 16 }
 0x47a   : > { %v3329_v37 = vpop.trf.xlu2 }
 0x482   : > { %v3330_v38 = vpop.trf.xlu2 }
 0x483   : > { %v3326_v39 = vpop.trf.xlu0 }
 0x484   : > { %v3323_v40 = vpop.trf.xlu1  ;;  %v1507_v49 = vrot.slane %v3326_v39, 4  ;;  %v1111_v39 = vrot.slane %v3899_v45, 4 }
 0x485   : > { %v1501_v42 = vrot.slane %v3323_v40, 4 }
 0x487   : > { %v1502_v48 = vsel %vm1112_vm8, %v1501_v42, %v3329_v37  ;;  %v1126_v42 = vrot.slane %v3892_v43, 4 }
 0x488   : > { %v1506_v50 = vperm.slane %v1502_v48, %v3908_v58  ;;  %v1124_v48 = vrot.slane %v3901_v46, 4 }
 0x48a   : > { %v3332_v51 = vpop.trf.xlu2  ;;  %v1515_v54 = vrot.slane %v1506_v50, 4 }
 0x48b   : > { %v1508_v52 = vsel %vm1112_vm8, %v1507_v49, %v3332_v51  ;;  %v3327_v57 = vpop.trf.xlu0  ;;  %v1127_v49 = vsel %vm1112_vm8, %v3901_v46, %v1126_v42  ;;  %v1125_v51 = vsel %vm1112_vm8, %v1124_v48, %v3892_v43 }
 0x48c   : > { %v3324_v53 = vpop.trf.xlu1  ;;  %v1512_v55 = vperm.slane %v1508_v52, %v3908_v58  ;;  %v1535_v62 = vrot.slane %v3327_v57, 4 }
 0x48d   : > { %v1529_v56 = vrot.slane %v3324_v53, 4  ;;  %v1131_v53 = vperm.slane %v1125_v51, %v3908_v58 }
 0x48e   : > { %v1513_v59 = vrot.slane %v1512_v55, 4  ;;  %v1516_v60 = vsel %vm1112_vm8, %v1512_v55, %v1515_v54 }
 0x48f   : > { %v1530_v61 = vsel %vm1112_vm8, %v1529_v56, %v3330_v38  ;;  %v1524_v1 = vperm.slane %v1516_v60, %v3917_v8  ;;  %v1114_v38 = vrot.slane %v3887_v41, 4  ;;  %v1136_v57 = vrot.slane %v1131_v53, 4 }
 0x490   : > { %v1514_v63 = vsel %vm1112_vm8, %v1513_v59, %v1506_v50  ;;  %v1534_v0 = vperm.slane %v1530_v61, %v3908_v58 }
 0x491   : > { %v1520_v2 = vperm.slane %v1514_v63, %v3917_v8  ;;  %v1527_v7 = vrot.slane %v1524_v1, 4  ;;  %v1577_v14 = vshrl.u32 %v1524_v1, 16  ;;  %v1115_v40 = vsel %vm1112_vm8, %v3899_v45, %v1114_v38 }
 0x492   : > { %v3333_v3 = vpop.trf.xlu2  ;;  %v1543_v5 = vrot.slane %v1534_v0, 4  ;;  %v1123_v50 = vperm.slane %v1115_v40, %v3908_v58 }
 0x493   : > { %v1536_v4 = vsel %vm1112_vm8, %v1535_v62, %v3333_v3  ;;  %v1525_v11 = vrot.slane %v1520_v2, 4  ;;  %v1528_v18 = vsel %vm1112_vm8, 0, %v1527_v7  ;;  %v1561_v35 = vshrl.u32 %v1520_v2, 16 }
 0x494   : > { %v1540_v6 = vperm.slane %v1536_v4, %v3908_v58  ;;  %v1585_v25 = vshrl.u32 %v1528_v18, 16  ;;  %v1150_v45 = vrot.slane %v1123_v50, 4 }
 0x495   : > { %v1526_v20 = vsel %vm1112_vm8, 0, %v1525_v11 }
 0x496   : > { %v1541_v9 = vrot.slane %v1540_v6, 4  ;;  %v1544_v10 = vsel %vm1112_vm8, %v1540_v6, %v1543_v5  ;;  %v1569_v30 = vshrl.u32 %v1526_v20, 16 }
 0x497   : > { %v1552_v12 = vperm.slane %v1544_v10, %v3917_v8 }
 0x498   : > { %v1542_v13 = vsel %vm1112_vm8, %v1541_v9, %v1534_v0 }
 0x499   : > { %v1548_v15 = vperm.slane %v1542_v13, %v3917_v8  ;;  %v1578_v16 = vshrl.u32 %v1552_v12, 16  ;;  %v1555_v19 = vrot.slane %v1552_v12, 4  ;;  %v1575_v21 = vpack.i.b16 %v1552_v12, %v1524_v1 }
 0x49b   : > { %v1579_v22 = vpack.i.b16 %v1578_v16, %v1577_v14  ;;  %v1556_v23 = vsel %vm1112_vm8, 0, %v1555_v19  ;;  %v1553_v24 = vrot.slane %v1548_v15, 4  ;;  %v1562_v34 = vshrl.u32 %v1548_v15, 16 }
 0x49c   : > { %v1586_v26 = vshrl.u32 %v1556_v23, 16  ;;  %v1583_v28 = vpack.i.b16 %v1556_v23, %v1528_v18  ;;  %v1559_v36 = vpack.i.b16 %v1548_v15, %v1520_v2 }
 0x49d   : > { %3334 = vxpose.binary.xlu2.c.b16.start.end [1/2] (short) (narrow) %v1579_v22, %v1575_v21, 16  ;;  %v1554_v27 = vsel %vm1112_vm8, 0, %v1553_v24  ;;  %v1563_v37 = vpack.i.b16 %v1562_v34, %v1561_v35 }
 0x49e   : > { %v1587_v29 = vpack.i.b16 %v1586_v26, %v1585_v25  ;;  %v1570_v31 = vshrl.u32 %v1554_v27, 16  ;;  %v1567_v32 = vpack.i.b16 %v1554_v27, %v1526_v20 }
 0x4a0   : > { %3340 = vxpose.binary.xlu1.c.b16.start.end [1/2] (short) (narrow) %v1587_v29, %v1583_v28, 16  ;;  %v1571_v33 = vpack.i.b16 %v1570_v31, %v1569_v30 }
 0x4a2   : > { %3337 = vxpose.binary.xlu0.c.b16.start.end [1/2] (short) (narrow) %v1571_v33, %v1567_v32, 16 }
 0x4b0   : > { %3343 = vxpose.binary.xlu1.c.b16.start.end [1/2] (short) (narrow) %v1563_v37, %v1559_v36, 16 }
 0x506   : > { %3352 = vrot.lane.b32.xlu2 %v3905_v47, %s3534_s28  ;;  %v1113_v47 = vsel %vm1112_vm8, %v1111_v39, %v3887_v41 }
 0x507   : > { %v1119_v52 = vperm.slane %v1113_v47, %v3908_v58 }
 0x509   : > { %v1138_v56 = vrot.slane %v1119_v52, 4  ;;  %v1137_v62 = vsel %vm1112_vm8, %v1136_v57, %v1119_v52 }
 0x50a   : > { %v1143_v0 = vperm.slane %v1137_v62, %v3917_v8 }
 0x50b   : > { %v1139_v59 = vsel %vm1112_vm8, %v1131_v53, %v1138_v56 }
 0x50c   : > { %v1147_v60 = vperm.slane %v1139_v59, %v3917_v8  ;;  %v1160_v5 = vrot.slane %v1143_v0, 4  ;;  %v1304_v29 = vpack.c.bf16 %v1143_v0, %v1143_v0 }
 0x50e   : > { %v1162_v1 = vrot.slane %v1147_v60, 4  ;;  %v1161_v16 = vsel %vm1112_vm8, 0.0, %v1160_v5  ;;  %v1306_v18 = vpack.c.bf16 %v1147_v60, %v1147_v60 }
 0x50f   : > { %v1305_v24 = vpack.c.bf16 %v1161_v16, %v1161_v16 }
 0x510   : > { %3347 = vrot.lane.b32.xlu0 %v3896_v44, %s3534_s28  ;;  %v1135_v44 = vperm.slane %v1127_v49, %v3908_v58  ;;  %v1163_v7 = vsel %vm1112_vm8, 0.0, %v1162_v1 }
 0x511   : > { %v1307_v15 = vpack.c.bf16 %v1163_v7, %v1163_v7 }
 0x512   : > { %v1148_v54 = vrot.slane %v1135_v44, 4  ;;  %v1151_v55 = vsel %vm1112_vm8, %v1135_v44, %v1150_v45 }
 0x513   : > { %v1159_v46 = vperm.slane %v1151_v55, %v3917_v8 }
 0x514   : > { %v1149_v41 = vsel %vm1112_vm8, %v1148_v54, %v1123_v50 }
 0x515   : > { %v1155_v43 = vperm.slane %v1149_v41, %v3917_v8  ;;  %v1166_v61 = vrot.slane %v1159_v46, 4  ;;  %v1310_v9 = vpack.c.bf16 %v1159_v46, %v1159_v46 }
 0x517   : > { %v1164_v2 = vrot.slane %v1155_v43, 4  ;;  %v1167_v3 = vsel %vm1112_vm8, 0.0, %v1166_v61  ;;  %v1308_v19 = vpack.c.bf16 %v1155_v43, %v1155_v43  ;;  %v1327_v20 = vrot.slane %v1310_v9, 4 }
 0x518   : > { %v1311_v4 = vpack.c.bf16 %v1167_v3, %v1167_v3 }
 0x519   : > { %v1165_v6 = vsel %vm1112_vm8, 0.0, %v1164_v2  ;;  %v1320_v27 = vrot.slane %v1308_v19, 4  ;;  %v1328_v30 = vsel %vm1112_vm8, %v1327_v20, %v1306_v18 }
 0x51a   : > { %v1309_v12 = vpack.c.bf16 %v1165_v6, %v1165_v6  ;;  %v1347_v13 = vrot.slane %v1311_v4, 4  ;;  %v1332_v37 = vperm.slane %v1328_v30, %v3908_v58 }
 0x51b   : > { %v1322_v40 = vsel %vm1112_vm8, %v1320_v27, %v1304_v29 }
 0x51c   : > { %v1341_v23 = vrot.slane %v1309_v12, 4  ;;  %v1348_v25 = vsel %vm1112_vm8, %v1347_v13, %v1307_v15  ;;  %v1326_v51 = vperm.slane %v1322_v40, %v3908_v58  ;;  %v1333_v52 = vrot.slane %v1332_v37, 4 }
 0x51d   : > { %v1352_v32 = vperm.slane %v1348_v25, %v3908_v58 }
 0x51e   : > { %v1342_v35 = vsel %vm1112_vm8, %v1341_v23, %v1305_v24  ;;  %v1334_v46 = vsel %vm1112_vm8, %v1333_v52, %v1326_v51 }
 0x51f   : > { %v1346_v48 = vperm.slane %v1342_v35, %v3908_v58  ;;  %v1353_v49 = vrot.slane %v1352_v32, 4  ;;  %v1338_v61 = vperm.slane %v1334_v46, %v3917_v8 }
 0x521   : > { %v1354_v54 = vsel %vm1112_vm8, %v1353_v49, %v1346_v48  ;;  %v1339_v5 = vrot.slane %v1338_v61, 4  ;;  %v1364_v16 = vshrl.u32 %v1338_v61, 16 }
 0x522   : > { %v1358_v41 = vperm.slane %v1354_v54, %v3917_v8 }
 0x524   : > { %v1359_v0 = vrot.slane %v1358_v41, 4  ;;  %v1363_v15 = vpack.i.b16 %v1358_v41, %v1338_v61 }
 0x526   : > { %v1360_v18 = vsel %vm1112_vm8, 0, %v1359_v0 }
 0x527   : > { %v1371_v25 = vshrl.u32 %v1360_v18, 16 }
 0x53e   : > { %v3335_v21 = vpop.trf.xlu2 }
 0x53f   : > { %v1717_v26 = vrot.slane %v3335_v21, 4 }
 0x546   : > { %v3336_v50 = vpop.trf.xlu2 }
 0x547   : > { %v1737_v44 = vrot.slane %v3336_v50, 4 }
 0x54c   : > { %v3341_v63 = vpop.trf.xlu1 }
 0x54d   : > { %v1723_v11 = vrot.slane %v3341_v63, 4 }
 0x54e   : > { %v3338_v10 = vpop.trf.xlu0 }
 0x54f   : > { %v1724_v22 = vsel %vm1112_vm8, %v1723_v11, %v3338_v10  ;;  %v1365_v10 = vshrl.u32 %v1358_v41, 16 }
 0x550   : > { %v1728_v28 = vperm.slane %v1724_v22, %v3908_v58  ;;  %v1340_v22 = vsel %vm1112_vm8, 0, %v1339_v5 }
 0x551   : > { %v1366_v21 = vpack.i.b16 %v1365_v10, %v1364_v16  ;;  %v1369_v24 = vpack.i.b16 %v1360_v18, %v1340_v22  ;;  %v1370_v27 = vshrl.u32 %v1340_v22, 16 }
 0x552   : > { %v1729_v38 = vrot.slane %v1728_v28, 4 }
 0x553   : > { %v1372_v30 = vpack.i.b16 %v1371_v25, %v1370_v27 }
 0x554   : > { %v3342_v14 = vpop.trf.xlu1 }
 0x555   : > { %v1743_v31 = vrot.slane %v3342_v14, 4 }
 0x556   : > { %v3339_v33 = vpop.trf.xlu0 }
 0x557   : > { %v1744_v42 = vsel %vm1112_vm8, %v1743_v31, %v3339_v33 }
 0x558   : > { %v1748_v45 = vperm.slane %v1744_v42, %v3908_v58 }
 0x55a   : > { %v1749_v57 = vrot.slane %v1748_v45, 4 }
 0x55c   : > { %v3344_v34 = vpop.trf.xlu1 }
 0x55d   : > { %v1718_v36 = vsel %vm1112_vm8, %v1717_v26, %v3344_v34 }
 0x55e   : > { %v1722_v39 = vperm.slane %v1718_v36, %v3908_v58 }
 0x560   : > { %v1730_v47 = vsel %vm1112_vm8, %v1729_v38, %v1722_v39  ;;  %v3353_v26 = vpop.permute.xlu2 %3352 }
 0x561   : > { %v1734_v53 = vperm.slane %v1730_v47, %v3917_v8  ;;  %v3355_v28 = vunpack.i.h.bf16 %v3353_v26  ;;  %v3354_v29 = vunpack.i.l.bf16 %v3353_v26 }
 0x563   : > { %v1735_v60 = vrot.slane %v1734_v53, 4  ;;  %v1760_v63 = vshrl.u32 %v1734_v53, 16  ;;  %v1248_v32 = vrot.slane %v3355_v28, 4  ;;  %v1260_v33 = vrot.slane %v3354_v29, 4 }
 0x564   : > { %v3345_v55 = vpop.trf.xlu1 }
 0x565   : > { %v1738_v56 = vsel %vm1112_vm8, %v1737_v44, %v3345_v55  ;;  %v1736_v3 = vsel %vm1112_vm8, 0, %v1735_v60 }
 0x566   : > { %v1742_v59 = vperm.slane %v1738_v56, %v3908_v58  ;;  %v1766_v12 = vshrl.u32 %v1736_v3, 16 }
 0x568   : > { %v1750_v43 = vsel %vm1112_vm8, %v1749_v57, %v1742_v59 }
 0x569   : > { %v1754_v62 = vperm.slane %v1750_v43, %v3917_v8 }
 0x56b   : > { %v1759_v1 = vpack.i.b16 %v1754_v62, %v1734_v53  ;;  %v1761_v2 = vshrl.u32 %v1754_v62, 16  ;;  %v1755_v4 = vrot.slane %v1754_v62, 4 }
 0x56d   : > { %v1775_v6 = vsel %vm1773_vm9, %v1759_v1, 0  ;;  %v1762_v7 = vpack.i.b16 %v1761_v2, %v1760_v63  ;;  %v1756_v9 = vsel %vm1112_vm8, 0, %v1755_v4  ;;  %v1847_v1 = vlaneseq }
 0x56e   : > { %1784 = vmatpush.bf16.msra.mxu1 %v1775_v6  ;;  %v1765_v11 = vpack.i.b16 %v1756_v9, %v1736_v3  ;;  %v1767_v13 = vshrl.u32 %v1756_v9, 16 }
 0x56f   : > { %v1794_v14 = vsel %vm1773_vm9, %v1762_v7, 0  ;;  %v1848_v2 = vshrl.u32 %v1847_v1, 7  ;;  %v1850_v3 = vand.u32 127, %v1847_v1 }
 0x570   : > { %1803 = vmatpush.bf16.msra.mxu2 %v1794_v14  ;;  %v1813_v19 = vsel %vm1773_vm9, %v1765_v11, 0  ;;  %v1768_v20 = vpack.i.b16 %v1767_v13, %v1766_v12 }
 0x571   : > { %3133 = vmatmul.msk.bf16.vlgmr.msra.gmra.mxu1 %vm1769_vm10, %v1363_v15  ;;  %1822 = vmatpush.bf16.msra.mxu3 %v1813_v19  ;;  %vm1851_vm11 = vcmp.ge.s32.totalorder %v1848_v2, %v1850_v3 }
 0x572   : > { %v1832_v23 = vsel %vm1773_vm9, %v1768_v20, 0 }
 0x573   : > { %3134 = vmatmul.msk.bf16.vlgmr.msra.gmra.mxu2 %vm1769_vm10, %v1366_v21  ;;  %1841 = vmatpush.bf16.msrb.mxu1 %v1832_v23 }
 0x574   : > { %3135 = vmatmul.msk.bf16.vlgmr.msra.gmra.mxu3 %vm1769_vm10, %v1369_v24 }
 0x581   : > { %3136 = vmatmul.msk.bf16.vlgmr.msrb.gmra.mxu1 %vm1769_vm10, %v1372_v30 }
 0x582   : > { %v3348_v31 = vpop.permute.xlu0 %3347 }
 0x583   : > { %v3350_v34 = vunpack.i.h.bf16 %v3348_v31  ;;  %v3349_v35 = vunpack.i.l.bf16 %v3348_v31 }
 0x585   : > { %v1249_v36 = vsel %vm1112_vm8, %v1248_v32, %v3350_v34  ;;  %v1250_v37 = vrot.slane %v3350_v34, 4  ;;  %v1261_v38 = vsel %vm1112_vm8, %v1260_v33, %v3349_v35  ;;  %v1262_v39 = vrot.slane %v3349_v35, 4 }
 0x586   : > { %v1267_v40 = vperm.slane %v1261_v38, %v3908_v58  ;;  %v1255_v49 = vperm.slane %v1249_v36, %v3908_v58 }
 0x587   : > { %v1251_v42 = vsel %vm1112_vm8, %v3355_v28, %v1250_v37  ;;  %v1263_v48 = vsel %vm1112_vm8, %v3354_v29, %v1262_v39 }
 0x588   : > { %v1259_v50 = vperm.slane %v1251_v42, %v3908_v58  ;;  %v1271_v47 = vperm.slane %v1263_v48, %v3908_v58  ;;  %v1272_v44 = vrot.slane %v1267_v40, 4  ;;  %v1274_v46 = vrot.slane %v1255_v49, 4 }
 0x58a   : > { %v1286_v51 = vrot.slane %v1259_v50, 4  ;;  %v1284_v52 = vrot.slane %v1271_v47, 4  ;;  %v1273_v45 = vsel %vm1112_vm8, %v1272_v44, %v1255_v49  ;;  %v1275_v60 = vsel %vm1112_vm8, %v1267_v40, %v1274_v46 }
 0x58b   : > { %v1283_v43 = vperm.slane %v1275_v60, %v3917_v8  ;;  %v1279_v22 = vperm.slane %v1273_v45, %v3917_v8 }
 0x58c   : > { %v1285_v53 = vsel %vm1112_vm8, %v1284_v52, %v1259_v50  ;;  %v1287_v54 = vsel %vm1112_vm8, %v1271_v47, %v1286_v51 }
 0x58d   : > { %v1291_v55 = vperm.slane %v1285_v53, %v3917_v8  ;;  %v1298_v61 = vrot.slane %v1283_v43, 4  ;;  %v1908_v63 = vpack.c.bf16 %v1283_v43, %v1283_v43  ;;  %v1296_v23 = vrot.slane %v1279_v22, 4 }
 0x58e   : > { %v1295_v25 = vperm.slane %v1287_v54, %v3917_v8  ;;  %v1906_v26 = vpack.c.bf16 %v1279_v22, %v1279_v22 }
 0x58f   : > { %v1300_v56 = vrot.slane %v1291_v55, 4  ;;  %v1910_v59 = vpack.c.bf16 %v1291_v55, %v1291_v55  ;;  %v1299_v62 = vsel %vm1112_vm8, 0.0, %v1298_v61  ;;  %v1297_v24 = vsel %vm1112_vm8, 0.0, %v1296_v23 }
 0x590   : > { %v1909_v0 = vpack.c.bf16 %v1299_v62, %v1299_v62  ;;  %v1907_v27 = vpack.c.bf16 %v1297_v24, %v1297_v24  ;;  %v1302_v28 = vrot.slane %v1295_v25, 4  ;;  %v1912_v30 = vpack.c.bf16 %v1295_v25, %v1295_v25 }
 0x591   : > { %v1301_v57 = vsel %vm1112_vm8, 0.0, %v1300_v56 }
 0x592   : > { %v1911_v41 = vpack.c.bf16 %v1301_v57, %v1301_v57  ;;  %v1303_v29 = vsel %vm1112_vm8, 0.0, %v1302_v28 }
 0x593   : > { %v1913_v31 = vpack.c.bf16 %v1303_v29, %v1303_v29 }
 0x594   : > { %3356 = vxpose.binary.xlu1.c.b16.start.end [1/2] (short) (narrow) %v1911_v41, %v1910_v59, 16 }
 0x5a4   : > { %3365 = vxpose.binary.xlu1.c.b16.start.end [1/2] (short) (narrow) %v1909_v0, %v1908_v63, 16 }
 0x5ee   : > { %v1786_v4 = vpop.f32.mrf.mxu1 }
 0x5ef   : > { %v1854_v5 = vsel %vm1851_vm11, %v1786_v4, -1e+30 }
 0x5f0   : > { %v1858_v6 = vsel %vm1769_vm10, %v1854_v5, -inf }
 0x5f1   : > { %1859 = vmax.xlane.f32.xlu2 %v1858_v6 }
 0x5f6   : > { %v1788_v7 = vpop.f32.mrf.mxu1  ;;  %v1805_v9 = vpop.f32.mrf.mxu2 }
 0x5f7   : > { %v1855_v10 = vsel %vm1851_vm11, %v1805_v9, -1e+30  ;;  %v1824_v11 = vpop.f32.mrf.mxu3 }
 0x5f8   : > { %v1861_v12 = vsel %vm1769_vm10, %v1855_v10, -inf  ;;  %v1856_v16 = vsel %vm1851_vm11, %v1824_v11, -1e+30 }
 0x5f9   : > { %1862 = vmax.xlane.f32.xlu0 %v1861_v12  ;;  %v1864_v18 = vsel %vm1769_vm10, %v1856_v16, -inf }
 0x5fe   : > { %v1807_v13 = vpop.f32.mrf.mxu2  ;;  %v1843_v14 = vpop.f32.mrf.mxu1 }
 0x5ff   : > { %v1826_v15 = vpop.f32.mrf.mxu3  ;;  %v1857_v20 = vsel %vm1851_vm11, %v1843_v14, -1e+30 }
 0x600   : > { %v1867_v21 = vsel %vm1769_vm10, %v1857_v20, -inf }
 0x604   : > { %1865 = vmax.xlane.f32.xlu1 %v1864_v18 }
 0x606   : > { %v1845_v19 = vpop.f32.mrf.mxu1 }
 0x60c   : > { %1868 = vmax.xlane.f32.xlu1 %v1867_v21 }
 0x61a   : > { %3359 = vxpose.binary.xlu2.c.b16.start.end [1/2] (short) (narrow) %v1907_v27, %v1906_v26, 16 }
 0x622   : > { %3362 = vxpose.binary.xlu0.c.b16.start.end [1/2] (short) (narrow) %v1913_v31, %v1912_v30, 16 }
 0x640   : > { %v3357_v32 = vpop.trf.xlu1 }
 0x641   : > { %v2042_v41 = vrot.slane %v3357_v32, 4 }
 0x648   : > { %v3358_v33 = vpop.trf.xlu1 }
 0x649   : > { %v2070_v0 = vrot.slane %v3358_v33, 4 }
 0x650   : > { %v3366_v34 = vpop.trf.xlu1 }
 0x658   : > { %v3367_v37 = vpop.trf.xlu1 }
 0x664   : > { %v1860_v50 = vpop.xlane.xlu2 %1859 }
 0x665   : > { %v1870_v51 = vsub.f32 %v1854_v5, %v1860_v50 }
 0x667   : > { %v1874_v45 = vmul.f32 1.442695, %v1870_v51 }
 0x66c   : > { %v1863_v35 = vpop.xlane.xlu0 %1862 }
 0x66d   : > { %v1871_v36 = vsub.f32 %v1855_v10, %v1863_v35 }
 0x66f   : > { %v1876_v38 = vmul.f32 1.442695, %v1871_v36 }
 0x671   : > { %3405 = vpow2.f32 %v1876_v38 }
 0x677   : > { %v4046_v39 = vpop.eup %3405  ;;  %v1866_v40 = vpop.xlane.xlu1 %1865 }
 0x678   : > { %v1885_v42 = vsel %vm1769_vm10, %v4046_v39, 0.0  ;;  %v1872_v48 = vsub.f32 %v1856_v16, %v1866_v40 }
 0x679   : > { %1886 = vadd.xlane.f32.xlu1 %v1885_v42 }
 0x67a   : > { %v1878_v49 = vmul.f32 1.442695, %v1872_v48 }
 0x67c   : > { %3407 = vpow2.f32 %v1878_v49 }
 0x67f   : > { %v1869_v47 = vpop.xlane.xlu1 %1868 }
 0x680   : > { %v1873_v44 = vsub.f32 %v1857_v20, %v1869_v47 }
 0x682   : > { %v1880_v52 = vmul.f32 1.442695, %v1873_v44  ;;  %v4050_v53 = vpop.eup %3407 }
 0x683   : > { %v1888_v55 = vsel %vm1769_vm10, %v4050_v53, 0.0 }
 0x684   : > { %3409 = vpow2.f32 %v1880_v52 }
 0x685   : > { %3411 = vpow2.f32 %v1874_v45 }
 0x68a   : > { %v4052_v54 = vpop.eup %3409 }
 0x68b   : > { %1889 = vadd.xlane.f32.xlu2 %v1888_v55  ;;  %v1891_v56 = vsel %vm1769_vm10, %v4052_v54, 0.0  ;;  %v4058_v46 = vpop.eup %3411 }
 0x68c   : > { %1892 = vadd.xlane.f32.xlu1 %v1891_v56  ;;  %v1882_v57 = vsel %vm1769_vm10, %v4058_v46, 0.0 }
 0x693   : > { %1883 = vadd.xlane.f32.xlu0 %v1882_v57 }
 0x6bb   : > { %v3360_v59 = vpop.trf.xlu2 }
 0x6bc   : > { %v2043_v60 = vsel %vm1112_vm8, %v2042_v41, %v3360_v59 }
 0x6bd   : > { %v2047_v43 = vperm.slane %v2043_v60, %v3908_v58 }
 0x6bf   : > { %v2056_v2 = vrot.slane %v2047_v43, 4 }
 0x6c3   : > { %v3361_v63 = vpop.trf.xlu2 }
 0x6c4   : > { %v2071_v4 = vsel %vm1112_vm8, %v2070_v0, %v3361_v63 }
 0x6c5   : > { %v2075_v7 = vperm.slane %v2071_v4, %v3908_v58 }
 0x6c7   : > { %v2084_v15 = vrot.slane %v2075_v7, 4 }
 0x6ce   : > { %v3363_v61 = vpop.trf.xlu0 }
 0x6cf   : > { %v2048_v62 = vrot.slane %v3363_v61, 4 }
 0x6d1   : > { %v2049_v1 = vsel %vm1112_vm8, %v2048_v62, %v3366_v34 }
 0x6d2   : > { %v2053_v3 = vperm.slane %v2049_v1, %v3908_v58 }
 0x6d4   : > { %v2054_v5 = vrot.slane %v2053_v3, 4  ;;  %v2057_v6 = vsel %vm1112_vm8, %v2053_v3, %v2056_v2 }
 0x6d5   : > { %v2065_v10 = vperm.slane %v2057_v6, %v3917_v8 }
 0x6d6   : > { %v2055_v9 = vsel %vm1112_vm8, %v2054_v5, %v2047_v43  ;;  %v3364_v11 = vpop.trf.xlu0 }
 0x6d7   : > { %v2076_v12 = vrot.slane %v3364_v11, 4  ;;  %v2061_v13 = vperm.slane %v2055_v9, %v3917_v8  ;;  %v2068_v18 = vrot.slane %v2065_v10, 4  ;;  %v2118_v24 = vshrl.u32 %v2065_v10, 16 }
 0x6d9   : > { %v2077_v14 = vsel %vm1112_vm8, %v2076_v12, %v3367_v37  ;;  %v2066_v21 = vrot.slane %v2061_v13, 4  ;;  %v2069_v25 = vsel %vm1112_vm8, 0, %v2068_v18  ;;  %v2102_v31 = vshrl.u32 %v2061_v13, 16 }
 0x6da   : > { %v2081_v16 = vperm.slane %v2077_v14, %v3908_v58  ;;  %v2126_v37 = vshrl.u32 %v2069_v25, 16 }
 0x6db   : > { %v2067_v30 = vsel %vm1112_vm8, 0, %v2066_v21 }
 0x6dc   : > { %v2082_v19 = vrot.slane %v2081_v16, 4  ;;  %v2085_v20 = vsel %vm1112_vm8, %v2081_v16, %v2084_v15  ;;  %v2110_v48 = vshrl.u32 %v2067_v30, 16 }
 0x6dd   : > { %v2093_v22 = vperm.slane %v2085_v20, %v3917_v8 }
 0x6de   : > { %v2083_v23 = vsel %vm1112_vm8, %v2082_v19, %v2075_v7 }
 0x6df   : > { %v2089_v26 = vperm.slane %v2083_v23, %v3917_v8  ;;  %v2116_v27 = vpack.i.b16 %v2093_v22, %v2065_v10  ;;  %v2119_v28 = vshrl.u32 %v2093_v22, 16  ;;  %v2096_v29 = vrot.slane %v2093_v22, 4 }
 0x6e1   : > { %v2120_v32 = vpack.i.b16 %v2119_v28, %v2118_v24  ;;  %v2097_v33 = vsel %vm1112_vm8, 0, %v2096_v29  ;;  %v2094_v34 = vrot.slane %v2089_v26, 4  ;;  %v2100_v35 = vpack.i.b16 %v2089_v26, %v2061_v13 }
 0x6e2   : > { %v2124_v36 = vpack.i.b16 %v2097_v33, %v2069_v25  ;;  %v2127_v38 = vshrl.u32 %v2097_v33, 16  ;;  %v2103_v40 = vshrl.u32 %v2089_v26, 16 }
 0x6e3   : > { %3374 = vxpose.binary.xlu0.c.b16.start.end [1/2] (short) (narrow) %v2120_v32, %v2116_v27, 16  ;;  %v2095_v42 = vsel %vm1112_vm8, 0, %v2094_v34 }
 0x6e4   : > { %v2128_v49 = vpack.i.b16 %v2127_v38, %v2126_v37  ;;  %v2108_v50 = vpack.i.b16 %v2095_v42, %v2067_v30  ;;  %v2111_v47 = vshrl.u32 %v2095_v42, 16  ;;  %v2104_v44 = vpack.i.b16 %v2103_v40, %v2102_v31 }
 0x6e6   : > { %3368 = vxpose.binary.xlu1.c.b16.start.end [1/2] (short) (narrow) %v2128_v49, %v2124_v36, 16  ;;  %v2112_v51 = vpack.i.b16 %v2111_v47, %v2110_v48 }
 0x6e8   : > { %3371 = vxpose.binary.xlu2.c.b16.start.end [1/2] (short) (narrow) %v2112_v51, %v2108_v50, 16 }
 0x6ec   : > { %v1887_v52 = vpop.xlane.xlu1 %1886 }
 0x6ed   : > { %3413 = vrcp.f32 %v1887_v52 }
 0x6f3   : > { %v3414_v45 = vpop.eup %3413 }
 0x6f4   : > { %v1899_v55 = vmul.f32 %v3414_v45, %v4046_v39 }
 0x6f6   : > { %v1903_v56 = vpack.c.bf16 %v1899_v55, %v1899_v55 }
 0x6f8   : > { %3377 = vxpose.binary.xlu2.c.b16.start.end [1/2] (short) (narrow) %v2104_v44, %v2100_v35, 16  ;;  %v2333_v57 = vsel %vm1769_vm10, %v1903_v56, 0 }
 0x6f9   : > { %2342 = vmatpush.bf16.xpose.msrb.mxu3 %v2333_v57 }
 0x6fe   : > { %v1890_v59 = vpop.xlane.xlu2 %1889 }
 0x6ff   : > { %3415 = vrcp.f32 %v1890_v59  ;;  %v1893_v41 = vpop.xlane.xlu1 %1892 }
 0x700   : > { %3417 = vrcp.f32 %v1893_v41 }
 0x705   : > { %v3416_v60 = vpop.eup %3415 }
 0x706   : > { %v3418_v43 = vpop.eup %3417  ;;  %v1884_v61 = vpop.xlane.xlu0 %1883  ;;  %v1900_v62 = vmul.f32 %v3416_v60, %v4050_v53 }
 0x707   : > { %3419 = vrcp.f32 %v1884_v61  ;;  %v1901_v63 = vmul.f32 %v3418_v43, %v4052_v54 }
 0x708   : > { %v1904_v0 = vpack.c.bf16 %v1900_v62, %v1900_v62 }
 0x709   : > { %v1905_v1 = vpack.c.bf16 %v1901_v63, %v1901_v63 }
 0x70a   : > { %v2352_v39 = vsel %vm1769_vm10, %v1904_v0, 0 }
 0x70b   : > { %2361 = vmatpush.bf16.xpose.msra.mxu1 %v2352_v39  ;;  %v2371_v2 = vsel %vm1769_vm10, %v1905_v1, 0 }
 0x70d   : > { %v3420_v3 = vpop.eup %3419 }
 0x70e   : > { %v1898_v4 = vmul.f32 %v3420_v3, %v4058_v46 }
 0x710   : > { %v1902_v5 = vpack.c.bf16 %v1898_v4, %v1898_v4 }
 0x712   : > { %v2314_v6 = vsel %vm1769_vm10, %v1902_v5, 0 }
 0x713   : > { %2380 = vmatpush.bf16.xpose.msrb.mxu1 %v2371_v2  ;;  %2323 = vmatpush.bf16.xpose.msrb.mxu2 %v2314_v6 }
 0x789   : > { %v3372_v7 = vpop.trf.xlu2 }
 0x78f   : > { %v3375_v9 = vpop.trf.xlu0 }
 0x790   : > { %v2258_v12 = vrot.slane %v3375_v9, 4 }
 0x791   : > { %v3373_v53 = vpop.trf.xlu2 }
 0x792   : > { %v3369_v10 = vpop.trf.xlu1 }
 0x793   : > { %v2264_v54 = vrot.slane %v3369_v10, 4 }
 0x795   : > { %v2265_v11 = vsel %vm1112_vm8, %v2264_v54, %v3372_v7 }
 0x796   : > { %v2269_v13 = vperm.slane %v2265_v11, %v3908_v58 }
 0x797   : > { %v3376_v19 = vpop.trf.xlu0 }
 0x798   : > { %v2270_v20 = vrot.slane %v2269_v13, 4  ;;  %v2278_v22 = vrot.slane %v3376_v19, 4 }
 0x799   : > { %v3378_v14 = vpop.trf.xlu2 }
 0x79a   : > { %v2259_v15 = vsel %vm1112_vm8, %v2258_v12, %v3378_v14  ;;  %v3370_v16 = vpop.trf.xlu1 }
 0x79b   : > { %v2263_v46 = vperm.slane %v2259_v15, %v3908_v58  ;;  %v2284_v18 = vrot.slane %v3370_v16, 4 }
 0x79d   : > { %v2285_v21 = vsel %vm1112_vm8, %v2284_v18, %v3373_v53  ;;  %v2271_v23 = vsel %vm1112_vm8, %v2270_v20, %v2263_v46 }
 0x79e   : > { %v2289_v24 = vperm.slane %v2285_v21, %v3908_v58  ;;  %v2275_v26 = vperm.slane %v2271_v23, %v3917_v8 }
 0x7a0   : > { %v2290_v28 = vrot.slane %v2289_v24, 4  ;;  %v2276_v31 = vrot.slane %v2275_v26, 4  ;;  %v2301_v35 = vshrl.u32 %v2275_v26, 16 }
 0x7a1   : > { %v3379_v25 = vpop.trf.xlu2 }
 0x7a2   : > { %v2279_v27 = vsel %vm1112_vm8, %v2278_v22, %v3379_v25  ;;  %v2277_v38 = vsel %vm1112_vm8, 0, %v2276_v31 }
 0x7a3   : > { %v2283_v29 = vperm.slane %v2279_v27, %v3908_v58  ;;  %v2307_v49 = vshrl.u32 %v2277_v38, 16 }
 0x7a5   : > { %v2291_v30 = vsel %vm1112_vm8, %v2290_v28, %v2283_v29 }
 0x7a6   : > { %v2295_v32 = vperm.slane %v2291_v30, %v3917_v8 }
 0x7a8   : > { %v2296_v33 = vrot.slane %v2295_v32, 4  ;;  %v2300_v34 = vpack.i.b16 %v2295_v32, %v2275_v26  ;;  %v2302_v36 = vshrl.u32 %v2295_v32, 16 }
 0x7aa   : > { %3137 = vmatmul.msk.bf16.vlgmr.msrb.gmra.mxu2 %vm1769_vm10, %v2300_v34  ;;  %v2303_v37 = vpack.i.b16 %v2302_v36, %v2301_v35  ;;  %v2297_v40 = vsel %vm1112_vm8, 0, %v2296_v33 }
 0x7ab   : > { %v2306_v42 = vpack.i.b16 %v2297_v40, %v2277_v38  ;;  %v2308_v48 = vshrl.u32 %v2297_v40, 16 }
 0x7ac   : > { %3138 = vmatmul.msk.bf16.vlgmr.msrb.gmra.mxu3 %vm1769_vm10, %v2303_v37 }
 0x7ad   : > { %3139 = vmatmul.msk.bf16.vlgmr.msra.gmra.mxu1 %vm1769_vm10, %v2306_v42  ;;  %v2309_v50 = vpack.i.b16 %v2308_v48, %v2307_v49 }
 0x7bd   : > { %3140 = vmatmul.msk.bf16.vlgmr.msrb.gmra.mxu1 %vm1769_vm10, %v2309_v50 }
 0x82a   : > { %v2363_v47 = vpop.f32.mrf.mxu1 }
 0x82d   : > { %v2325_v44 = vpop.f32.mrf.mxu2 }
 0x82e   : > { %v3380_v51 = vpack.i.bf16 %v2325_v44, %v2363_v47 }
 0x82f   : > { %v2344_v52 = vpop.f32.mrf.mxu3 }
 0x830   : > { %3381 = vxpose.xlu0.b32.start.end [1/1] (short) (narrow) %v3380_v51, 8 }
 0x832   : > { %v2365_v45 = vpop.f32.mrf.mxu1 }
 0x835   : > { %v2327_v55 = vpop.f32.mrf.mxu2 }
 0x837   : > { %v2346_v56 = vpop.f32.mrf.mxu3 }
 0x83a   : > { %v2382_v57 = vpop.f32.mrf.mxu1 }
 0x83b   : > { %v3387_v59 = vpack.i.bf16 %v2344_v52, %v2382_v57 }
 0x83d   : > { %3388 = vxpose.xlu1.b32.start.end [1/1] (short) (narrow) %v3387_v59, 8 }
 0x842   : > { %v2384_v41 = vpop.f32.mrf.mxu1 }
 0x8d4   : > { %v3382_v60 = vpop.trf.xlu0 }
 0x8d5   : > { %v3386_v43 = vunpack.i.h.bf16 %v3382_v60  ;;  %v3383_v61 = vunpack.i.l.bf16 %v3382_v60 }
 0x8d7   : > { %v2516_v62 = vrot.slane %v3386_v43, 4  ;;  %v2514_v63 = vrot.slane %v3383_v61, 4 }
 0x8d9   : > { %v2515_v0 = vsel %vm1112_vm8, %v2514_v63, %v3386_v43  ;;  %v2517_v1 = vsel %vm1112_vm8, %v3383_v61, %v2516_v62 }
 0x8da   : > { %v2521_v4 = vperm.slane %v2515_v0, %v3908_v58  ;;  %v2525_v5 = vperm.slane %v2517_v1, %v3908_v58  ;;  %v3212_v1 = vld [vmem:[%s3733_s30 + $0x8] sm:$0xff] }
 0x8db   : > { %2671 = vmatpush.bf16.msra.mxu2 %v3212_v1 }
 0x8dc   : > { %v2540_v10 = vrot.slane %v2521_v4, 4  ;;  %v2552_v54 = vrot.slane %v2525_v5, 4 }
 0x8e1   : > { %v3389_v39 = vpop.trf.xlu1 }
 0x8e2   : > { %v3393_v2 = vunpack.i.h.bf16 %v3389_v39  ;;  %v3390_v3 = vunpack.i.l.bf16 %v3389_v39 }
 0x8e4   : > { %v2528_v6 = vrot.slane %v3393_v2, 4  ;;  %v2526_v7 = vrot.slane %v3390_v3, 4 }
 0x8e6   : > { %v2527_v53 = vsel %vm1112_vm8, %v2526_v7, %v3393_v2  ;;  %v2529_v9 = vsel %vm1112_vm8, %v3390_v3, %v2528_v6 }
 0x8e7   : > { %v2533_v11 = vperm.slane %v2527_v53, %v3908_v58  ;;  %v2537_v12 = vperm.slane %v2529_v9, %v3908_v58  ;;  %v3396_v53 = vld [vmem:[%s4331_s0] ss:$0 sm:$0xff] }
 0x8e9   : > { %v2538_v13 = vrot.slane %v2533_v11, 4  ;;  %v2541_v14 = vsel %vm1112_vm8, %v2533_v11, %v2540_v10  ;;  %v2550_v15 = vrot.slane %v2537_v12, 4  ;;  %v2553_v16 = vsel %vm1112_vm8, %v2537_v12, %v2552_v54  ;;  %v3423_v54 = vld [vmem:[#allocation2] sm:$0xff] }
 0x8ea   : > { %v2549_v46 = vperm.slane %v2541_v14, %v3917_v8  ;;  %v2561_v18 = vperm.slane %v2553_v16, %v3917_v8 }
 0x8eb   : > { %v2539_v19 = vsel %vm1112_vm8, %v2538_v13, %v2521_v4  ;;  %v2551_v20 = vsel %vm1112_vm8, %v2550_v15, %v2525_v5 }
 0x8ec   : > { %v2545_v21 = vperm.slane %v2539_v19, %v3917_v8  ;;  %v2557_v22 = vperm.slane %v2551_v20, %v3917_v8  ;;  %v2564_v23 = vrot.slane %v2549_v46, 4  ;;  %v2568_v24 = vrot.slane %v2561_v18, 4  ;;  %v3214_v19 = vld [vmem:[%s3750_s20 + $0x8] sm:$0xff]  ;;  %v3213_v20 = vld [vmem:[%s3750_s20] sm:$0xff] }
 0x8ed   : > { %2741 = vmatpush.bf16.msra.mxu3 %v3214_v19 }
 0x8ee   : > { %v2565_v25 = vsel %vm1112_vm8, 0.0, %v2564_v23  ;;  %v2562_v26 = vrot.slane %v2545_v21, 4  ;;  %v2566_v27 = vrot.slane %v2557_v22, 4  ;;  %v2569_v28 = vsel %vm1112_vm8, 0.0, %v2568_v24 }
 0x8ef   : > { %v2570_v29 = vsel %vm1112_vm8, %v2564_v23, %v2545_v21  ;;  %v2575_v30 = vrot.slane %v2565_v25, 4  ;;  %v2581_v31 = vsel %vm1112_vm8, %v2568_v24, %v2557_v22  ;;  %v2586_v32 = vrot.slane %v2569_v28, 4  ;;  %v3222_v21 = vld [vmem:[%s3760_s29 + $0x38] sm:$0xff]  ;;  %v3221_v24 = vld [vmem:[%s3760_s29 + $0x30] sm:$0xff] }
 0x8f0   : > { %v2563_v33 = vsel %vm1112_vm8, 0.0, %v2562_v26  ;;  %v2567_v34 = vsel %vm1112_vm8, 0.0, %v2566_v27  ;;  %v2574_v35 = vperm.slane %v2570_v29, %v3908_v58  ;;  %v2585_v36 = vperm.slane %v2581_v31, %v3908_v58  ;;  %2818 = vmatpush.bf16.msrb.mxu0 %v3222_v21  ;;  %v3220_v26 = vld [vmem:[%s3760_s29 + $0x28] sm:$0xff]  ;;  %v3219_v27 = vld [vmem:[%s3760_s29 + $0x20] sm:$0xff] }
 0x8f1   : > { %v2576_v37 = vsel %vm1112_vm8, %v2575_v30, %v2563_v33  ;;  %v2587_v38 = vsel %vm1112_vm8, %v2586_v32, %v2567_v34  ;;  %2742 = vmatpush.bf16.msra.mxu3 %v3213_v20  ;;  %v3218_v30 = vld [vmem:[%s3760_s29 + $0x18] sm:$0xff]  ;;  %v3217_v33 = vld [vmem:[%s3760_s29 + $0x10] sm:$0xff] }
 0x8f2   : > { %v2580_v40 = vperm.slane %v2576_v37, %v3908_v58  ;;  %v2591_v42 = vperm.slane %v2587_v38, %v3908_v58  ;;  %v2594_v48 = vrot.slane %v2574_v35, 4  ;;  %v2606_v49 = vrot.slane %v2585_v36, 4 }
 0x8f4   : > { %v2595_v50 = vsel %vm1112_vm8, %v2580_v40, %v2594_v48  ;;  %v2607_v47 = vsel %vm1112_vm8, %v2591_v42, %v2606_v49  ;;  %v2592_v44 = vrot.slane %v2580_v40, 4  ;;  %v2604_v51 = vrot.slane %v2591_v42, 4  ;;  %2819 = vmatpush.bf16.msrb.mxu0 %v3221_v24  ;;  %v3398_v40 = vld [vmem:[%s4332_s25] ss:$0 sm:$0xff] }
 0x8f5   : > { %v2603_v52 = vperm.slane %v2595_v50, %v3917_v8  ;;  %v2615_v45 = vperm.slane %v2607_v47, %v3917_v8  ;;  %v3216_v50 = vld [vmem:[%s3760_s29 + $0x8] sm:$0xff]  ;;  %v3215_v47 = vld [vmem:[%s3760_s29] sm:$0xff]  ;;  %s4333_s29 = sld [smem:[#allocation9_spill]] }
 0x8f6   : > { %v2593_v55 = vsel %vm1112_vm8, %v2592_v44, %v2574_v35  ;;  %v2605_v56 = vsel %vm1112_vm8, %v2604_v51, %v2585_v36  ;;  %v3397_v36 = vld [vmem:[%s741_s18] ss:$0 sm:$0xff] }
 0x8f7   : > { %v2622_v57 = vrot.slane %v2603_v52, 4  ;;  %v2620_v59 = vrot.slane %v2615_v45, 4  ;;  %v2599_v58 = vperm.slane %v2593_v55, %v3917_v8  ;;  %v2611_v41 = vperm.slane %v2605_v56, %v3917_v8  ;;  %v3211_v8 = vld [vmem:[%s3733_s30] sm:$0xff] }
 0x8f8   : > { %2672 = vmatpush.bf16.msra.mxu2 %v3211_v8  ;;  %2820 = vmatpush.bf16.msrb.mxu0 %v3220_v26  ;;  %v3399_v44 = vld [vmem:[%s752_s5] ss:$0 sm:$0xff] }
 0x8f9   : > { %v2623_v60 = vsel %vm1112_vm8, %v2615_v45, %v2622_v57  ;;  %v2621_v43 = vsel %vm1112_vm8, %v2620_v59, %v2603_v52  ;;  %v2616_v61 = vrot.slane %v2611_v41, 4  ;;  %v2618_v62 = vrot.slane %v2599_v58, 4  ;;  %v3400_v57 = vld [vmem:[%s760_s24] ss:$0 sm:$0xff] }
 0x8fa   : > { %2633 = vrot.lane.b32.xlu1 %v2623_v60, %s3535_s22  ;;  %2629 = vrot.lane.b32.xlu0 %v2621_v43, %s3536_s23 }
 0x8fb   : > { %v2619_v63 = vsel %vm1112_vm8, %v2611_v41, %v2618_v62  ;;  %v2617_v0 = vsel %vm1112_vm8, %v2616_v61, %v2599_v58  ;;  %p3191_p1 = scmp.ne.s32.totalorder %s4333_s29, 1 }
 0x8fc   : > { %2625 = vrot.lane.b32.xlu2 %v2619_v63, %s3537_s2  ;;  %2821 = vmatpush.bf16.msrb.mxu0 %v3219_v27  ;;  %s4334_s24 = sld [smem:[#allocation26_spill]] (!%p3191_p1) }
 0x8fd   : > { %s4335_s26 = sld [smem:[#allocation24_spill]] (!%p3191_p1) }
 0x8fe   : > { %s4336_s20 = sld [smem:[#allocation25_spill]] (!%p3191_p1) }
 0x8ff   : > { %s4337_s25 = sld [smem:[#allocation27_spill]] (!%p3191_p1) }
 0x900   : > { %2822 = vmatpush.bf16.msrb.mxu0 %v3218_v30 }
 0x904   : > { %2823 = vmatpush.bf16.msrb.mxu0 %v3217_v33 }
 0x908   : > { %2824 = vmatpush.bf16.msrb.mxu0 %v3216_v50 }
 0x90c   : > { %2825 = vmatpush.bf16.msrb.mxu0 %v3215_v47 }
 0x956   : > { %v2626_v39 = vpop.permute.xlu2 %2625 }
 0x957   : > { %v2636_v2 = vsel %vm1769_vm10, %v2617_v0, %v2626_v39 }
 0x96c   : > { %v2634_v3 = vpop.permute.xlu1 %2633  ;;  %v2630_v4 = vpop.permute.xlu0 %2629 }
 0x96d   : > { %v2638_v5 = vsel %vm2637_vm12, %v2636_v2, %v2630_v4 }
 0x96e   : > { %v2640_v6 = vsel %vm2639_vm13, %v2638_v5, %v2634_v3 }
 0x96f   : > { %v2641_v7 = vpack.c.bf16 %v2640_v6, %v2640_v6 }
 0x971   : > { %3149 = vmatmul.msk.bf16.vlgmr.msra.gmra.mxu2 %vm1030_vm3, %v2641_v7 }
 0x9f4   : > { %v2674_v9 = vpop.f32.mrf.mxu2 }
 0x9f5   : > { %v2675_v10 = vadd.f32 %v3396_v53, %v2674_v9 }
 0x9f7   : > { %v2678_v11 = vadd.f32 %v3423_v54, %v2675_v10 }
 0x9f9   : > { %v2681_v12 = vsel %vm1030_vm3, %v2678_v11, 0.0 }
 0x9fa   : > { %2682 = vadd.xlane.f32.xlu1 %v2681_v12 }
 0x9fc   : > { %v2676_v13 = vpop.f32.mrf.mxu2 }
 0xa6d   : > { %v2683_v14 = vpop.xlane.xlu1 %2682 }
 0xa6e   : > { %v2684_v15 = vmul.f32 %v2683_v14, %v3869_v17 }
 0xa70   : > { %v2685_v16 = vsub.f32 %v2678_v11, %v2684_v15 }
 0xa72   : > { %v2686_v46 = vmul.f32 %v2685_v16, %v2685_v16 }
 0xa74   : > { %v2687_v18 = vsel %vm1030_vm3, %v2686_v46, 0.0 }
 0xa75   : > { %2688 = vadd.xlane.f32.xlu2 %v2687_v18 }
 0xae8   : > { %v2689_v22 = vpop.xlane.xlu2 %2688 }
 0xae9   : > { %v2690_v23 = vmul.f32 %v2689_v22, %v3869_v17 }
 0xaeb   : > { %v2691_v25 = vadd.f32 1e-05, %v2690_v23 }
 0xaed   : > { %3421 = vrsqrt.f32 %v2691_v25  ;;  %vm2698_vm15 = vweird.f32 %v2691_v25 }
 0xaf3   : > { %v3422_v28 = vpop.eup %3421 }
 0xaf4   : > { %v2693_v29 = vmul.f32 %v3422_v28, %v2691_v25  ;;  %vm2699_vm14 = vweird.f32 %v3422_v28 }
 0xaf5   : > { %vm2700_vm0 = vmor %vm2698_vm15, %vm2699_vm14 }
 0xaf6   : > { %v2694_v31 = vmul.f32 %v3422_v28, %v2693_v29 }
 0xaf8   : > { %v2695_v32 = vmul.f32 0.5, %v2694_v31 }
 0xafa   : > { %v2696_v34 = vsub.f32 1.5, %v2695_v32 }
 0xafc   : > { %v2697_v35 = vmul.f32 %v3422_v28, %v2696_v34 }
 0xafe   : > { %v2701_v37 = vsel %vm2700_vm0, %v3422_v28, %v2697_v35 }
 0xaff   : > { %v2702_v38 = vmul.f32 %v2701_v37, %v2685_v16 }
 0xb01   : > { %v2706_v42 = vmul.f32 %v3397_v36, %v2702_v38 }
 0xb03   : > { %v2710_v48 = vadd.f32 %v3398_v40, %v2706_v42 }
 0xb05   : > { %v2711_v49 = vpack.c.bf16 %v2710_v48, %v2710_v48 }
 0xb07   : > { %3158 = vmatmul.msk.bf16.vlgmr.msra.gmra.mxu3 %vm1030_vm3, %v2711_v49 }
 0xb8a   : > { %v2744_v51 = vpop.f32.mrf.mxu3 }
 0xb8b   : > { %v2745_v52 = vadd.f32 %v3399_v44, %v2744_v51 }
 0xb8d   : > { %v2748_v45 = vmax.f32 %v2745_v52, 0.0 }
 0xb8f   : > { %v2749_v55 = vpack.c.bf16 %v2748_v45, %v2748_v45 }
 0xb91   : > { %2826 = vmatmul.bf16.vlgmr.msrb.gmra.mxu0 %v2749_v55 }
 0xb92   : > { %v2746_v56 = vpop.f32.mrf.mxu3 }
 0xc0e   : > { %v2827_v59 = vpop.f32.mrf.mxu0 }
 0xc0f   : > { %v2828_v58 = vadd.f32 %v3400_v57, %v2827_v59 }
 0xc11   : > { %v2831_v41 = vadd.f32 %v2828_v58, %v2678_v11 }
 0xc12   : > { %2836 = sbr.rel (%p3191_p1) target bundleno = 3499 (0xdab), region = 100 }
 0xc13   : > { %2832 = vst.msk [vmem:[#allocation2] sm:$0xff] %vm1030_vm3, %v2831_v41 }
 0xc16   : > { %v2829_v60 = vpop.f32.mrf.mxu0 }
 0xc17   : > { %v2839_v43 = vsel %vm1030_vm3, %v2831_v41, 0.0  ;;  %v3224_v8 = vld [vmem:[%s4334_s24 + $0x8] sm:$0xff]  ;;  %v3223_v39 = vld [vmem:[%s4334_s24] sm:$0xff] }
 0xc18   : > { %2840 = vadd.xlane.f32.xlu0 %v2839_v43  ;;  %2899 = vmatpush.bf16.msra.mxu0 %v3224_v8  ;;  %v3424_v54 = vld [vmem:[%s4335_s26] ss:$0 sm:$0xff] }
 0xc19   : > { %v3426_v16 = vld [vmem:[%s4337_s25] ss:$0 sm:$0xff] }
 0xc1c   : > { %2900 = vmatpush.bf16.msra.mxu0 %v3223_v39 }
 0xc8b   : > { %v2841_v61 = vpop.xlane.xlu0 %2840 }
 0xc8c   : > { %v2842_v62 = vmul.f32 %v2841_v61, %v3869_v17 }
 0xc8e   : > { %v2843_v63 = vsub.f32 %v2831_v41, %v2842_v62 }
 0xc90   : > { %v2844_v0 = vmul.f32 %v2843_v63, %v2843_v63 }
 0xc92   : > { %v2845_v1 = vsel %vm1030_vm3, %v2844_v0, 0.0 }
 0xc93   : > { %2846 = vadd.xlane.f32.xlu0 %v2845_v1 }
 0xd06   : > { %v2847_v2 = vpop.xlane.xlu0 %2846 }
 0xd07   : > { %v2848_v3 = vmul.f32 %v2847_v2, %v3869_v17  ;;  %v3425_v17 = vld [vmem:[%s4336_s20] ss:$0 sm:$0xff] }
 0xd09   : > { %v2849_v4 = vadd.f32 1e-05, %v2848_v3 }
 0xd0b   : > { %3427 = vrsqrt.f32 %v2849_v4  ;;  %vm2856_vm2 = vweird.f32 %v2849_v4 }
 0xd11   : > { %v3428_v5 = vpop.eup %3427 }
 0xd12   : > { %v2851_v6 = vmul.f32 %v3428_v5, %v2849_v4  ;;  %vm2857_vm1 = vweird.f32 %v3428_v5 }
 0xd13   : > { %vm2858_vm4 = vmor %vm2856_vm2, %vm2857_vm1 }
 0xd14   : > { %v2852_v7 = vmul.f32 %v3428_v5, %v2851_v6 }
 0xd16   : > { %v2853_v53 = vmul.f32 0.5, %v2852_v7 }
 0xd18   : > { %v2854_v9 = vsub.f32 1.5, %v2853_v53 }
 0xd1a   : > { %v2855_v10 = vmul.f32 %v3428_v5, %v2854_v9 }
 0xd1c   : > { %v2859_v11 = vsel %vm2858_vm4, %v3428_v5, %v2855_v10 }
 0xd1d   : > { %v2860_v12 = vmul.f32 %v2859_v11, %v2843_v63 }
 0xd1f   : > { %v2864_v13 = vmul.f32 %v3424_v54, %v2860_v12 }
 0xd21   : > { %v2868_v14 = vadd.f32 %v3425_v17, %v2864_v13 }
 0xd23   : > { %v2869_v15 = vpack.c.bf16 %v2868_v14, %v2868_v14 }
 0xd25   : > { %3200 = vmatmul.msk.bf16.vlgmr.msra.gmra.mxu0 %vm1030_vm3, %v2869_v15 }
 0xda2   : > { %v2902_v46 = vpop.f32.mrf.mxu0 }
 0xda3   : > { %v2903_v18 = vadd.f32 %v3426_v16, %v2902_v46 }
 0xda5   : > { %2906 = vst [vmem:[%s715_s21] sm:$0xff] %v2903_v18 }
 0xdaa   : > { %v2904_v19 = vpop.f32.mrf.mxu0 }
 0xdab PF: > { %s4338_s18 = sld [smem:[#allocation10_spill]]  ;;  %s2920_s2 = sshll.u32 %s715_s21, 4  ;;  %s2921_s2 = int_to_ptr.vmem [resolvable:$true] %s2920_s2 }
 0xdac   : > { %s4339_s6 = sld [smem:[#allocation7_spill]] }
 0xdad   : > { %s4341_s27 = sld [smem:[#allocation28_spill]] }
 0xdb1   : > { %s3202_s28 = sshll.u32 %s4338_s18, 3 }
 0xdb2   : > { %s4343_s26 = sand.u32 1, %s4339_s6  }
 0xdb3   : > { %s4342_s22 = smov %s4341_s27  ;;  %s2918_s23 = scalar_lea.hbm %s4341_s27, %s3202_s28 }
 0xdb4   : > { %s2922_s14 = sshll.u32 %s2918_s23, 4  ;;  %s2908_s0 = scalar_lea.sflag [#allocation4], %s4343_s26  ;;  %s2923_s14 = int_to_ptr.hbm [resolvable:$true] %s2922_s14 }
 0xdb5   : > { %s3443_s30 = sshra.s32 %s2923_s14, 4  ;;  %s3449_s25 = scalar_lea.hbm %s4342_s22, 16  ;;  %s3444_s30 = int_to_ptr.hbm [resolvable:$true] %s3443_s30 }
 0xdb6   : > { %s3445_s20 = scalar_lea.hbm %s3444_s30, 8  ;;  %p3450_p6 = scmp.lt.s32.totalorder %s3444_s30, %s4342_s22 }
 0xdb7   : > { %p3446_p2 = scmp.ne.s32.totalorder %s3444_s30, %s3445_s20  ;;  %p3451_p7 = scmp.lt.s32.totalorder %s3449_s25, %s3445_s20 }
 0xdb9   : > { %p3447_p4 = pnand %p3446_p2, %p3682_p3  ;;  %p3452_p8 = por %p3451_p7, %p3450_p6 }
 0xdbb   : > { %p3448_p5 = pneg %p3447_p4 }
 0xdbd   : > { %p3453_p10 = pnand %p3452_p8, %p3448_p5 }
 0xdbf   : > { %3456 = shalt.err (!%p3453_p10)
}
 0xdc0   : > { %3225 = dma.vmem_to_hbm [thread:$0]  (%p3682_p3), %s2921_s2, 128, %s2923_s14, %s2908_s0  }
 0xdc1 PF: > { %s4344_s19 = sld [smem:[#allocation13_spill]] }
 0xdc2   : > { %s4345_s21 = sld [smem:[#allocation6_spill]] }
 0xdc7   : > { %p3231_p11 = scmp.ge.s32.totalorder %s4344_s19, 2 }
 0xdc8   : > { %s2934_s29 = sand.u32 1, %s4345_s21  }
 0xdc9   : > { %p3228_p12 = pnand %p3231_p11, %p3692_p9  ;;  %s2935_s5 = scalar_lea.sflag [#allocation4], %s2934_s29 }
 0xdcb   : > { %p3229_p13 = pneg %p3228_p12 }
 0xdcd   : > { %3490 = dma.done.wait (%p3229_p13), %s2935_s5, 128  }
 0xdce   : > { %3492 = vsyncadd (%p3229_p13), %s2935_s5, 4294967168  ;;  %s31_s20 = sadd.s32 1, %s4344_s19   ;;  %s4347_s27 = sld [smem:[#allocation7_spill]] }
 0xdcf   : > { %p28_p0 = scmp.ge.s32.totalorder %s31_s20, 6   ;;  %s4348_s28 = sld [smem:[#allocation8_spill]] }
 0xdd0   : > { %s4349_s29 = sld [smem:[#allocation18_spill]] }
 0xdd1   : > { %s4350_s30 = sld [smem:[#allocation11_spill]]  ;;  %30 = sbr.rel (!%p28_p0) target bundleno = 16 (0x10), region = 168 }
 0xdd2   : > { %s4351_s0 = sld [smem:[#allocation12_spill]] }
 0xdd3   : > { %s4352_s19 = sld [smem:[#allocation14_spill]] }
 0xdd4   : > { %s4353_s1 = sld [smem:[#allocation16_spill]] }
 0xdd6   :  { %2941 = vsyncpa [#allocation4], 1 }
 0xdd7   :  { %2943 = vsyncpa [#allocation4 + $0x1], 1 }

</bundles_post_ra>
